<compile_context>
chip_gen: v7x
topology: tpu7x:2x2x1
jax: 0.10.0
libtpu: 0.0.40
codegen_flags: <defaults>
</compile_context>

<pallas_src>
import functools

import jax
import jax.numpy as jnp
from jax.experimental import pallas as pl
from jax.experimental.pallas import tpu as pltpu


def _round_up(x, m):
    return ((x + m - 1) // m) * m


def _multiblock_kernel(x_ref, w_ref, b_ref, o_ref, pad_buf, src_l, src_r, *,
                       W, P, B, stride, padw, num_layers, c_in0, c_out):
    """One grid step = a block of B images through ALL layers.

    x_ref   : (B, Cin, P)            input images, flattened spatial (P = H*W)
    w_ref   : (L*9, Cout_p, c_max)   per-(layer, tap) weight matrices
    b_ref   : (L, Cout_p, 1)         per-layer biases
    o_ref   : (B, Cout, P)           output (real channels only)
    pad_buf : (c_max, total)         activations with 128-lane zero gaps (VMEM)
    src_l   : (c_max, total)         pad_buf with last-image-column zeroed
    src_r   : (c_max, total)         pad_buf with first-image-column zeroed
    """
    c_max, total = pad_buf.shape
    cout_p = w_ref.shape[1]
    span = B * stride - padw          # first image start .. last image end
    base = padw                       # lane offset of image 0 inside pad_buf

    # ---- per-step init (scratch persists across steps and per core; we cannot
    #      gate this on program_id because the grid axis is "parallel") --------
    zero_strip = jnp.zeros((c_max, padw), jnp.float32)
    for j in range(B + 1):            # lead pad + the gap after every image
        pad_buf[:, j * stride:j * stride + padw] = zero_strip
    if c_in0 < c_max:                 # stale rows above layer-0 input channels
        zrow = jnp.zeros((c_max - c_in0, P), jnp.float32)
        for i in range(B):
            off = base + i * stride
            pad_buf[c_in0:c_max, off:off + P] = zrow

    # ---- drop the B input images into the buffer interior (aligned stores) ---
    for i in range(B):
        off = base + i * stride
        pad_buf[0:c_in0, off:off + P] = x_ref[i]

    # ---- lane-position masks (hoisted out of the layer loop) -----------------
    # Source-side masks: a "left neighbour" tap (kw=0) must never read a source
    # pixel from the last image column (horizontal wraparound), a "right
    # neighbour" tap (kw=2) must never read the first column.  Gap/lead lanes
    # are zero in pad_buf, so their mask value is irrelevant.
    q = jax.lax.broadcasted_iota(jnp.int32, (c_max, total), 1)
    r = (q + (stride - padw)) % stride            # within-image flat offset
    colq = r % W
    not_last_col = colq != (W - 1)
    not_first_col = colq != 0
    # Output-side mask: lanes belonging to the inter-image gaps stay zero.
    ql = jax.lax.broadcasted_iota(jnp.int32, (cout_p, span), 1)
    img_mask = (ql % stride) < P

    for layer in range(num_layers):
        cur = pad_buf[...]
        src_l[...] = jnp.where(not_last_col, cur, 0.0)
        src_r[...] = jnp.where(not_first_col, cur, 0.0)

        # 9 accumulating dots, one per 3x3 tap, reading shifted slices directly.
        acc = jnp.zeros((cout_p, span), jnp.float32)
        for kh in range(3):
            for kw in range(3):
                shift = (kh - 1) * W + (kw - 1)
                src = (src_l, pad_buf, src_r)[kw]
                tap = src[:, base + shift:base + shift + span]     # (c_max, span)
                acc = acc + jnp.dot(w_ref[layer * 9 + kh * 3 + kw], tap,
                                    preferred_element_type=jnp.float32)

        # Fused bias + ReLU; gap lanes forced back to zero so the next layer's
        # vertical taps at image borders keep reading zeros.
        act = jnp.where(img_mask, jnp.maximum(acc + b_ref[layer], 0.0), 0.0)

        if layer + 1 < num_layers:
            pad_buf[0:cout_p, base:base + span] = act
        else:
            for i in range(B):
                o_ref[i] = act[0:c_out, i * stride:i * stride + P].astype(o_ref.dtype)


def init_multiblock_params(key, num_layers, in_channels, out_channels):
    """Deterministic parameter init (shapes match the PyTorch module).

    Weights are kept as (3, 3, Cin, Cout); a real Conv2d checkpoint stored as
    (Cout, Cin, 3, 3) would need w.transpose(2, 3, 1, 0).
    """
    params = []
    cin = in_channels
    for _ in range(num_layers):
        kw_key, kb_key, key = jax.random.split(key, 3)
        fan_in = cin * 9
        w = jax.random.normal(kw_key, (3, 3, cin, out_channels), jnp.float32)
        w = w * (1.0 / jnp.sqrt(fan_in))
        b = jax.random.normal(kb_key, (out_channels,), jnp.float32) * 0.01
        params.append((w, b))
        cin = out_channels
    return params


def multiblock_forward(x_nchw, params, batch_tile=None):
    """MultiBlock.forward: (N, Cin, H, W) -> (N, Cout, H, W), all layers fused."""
    N, Cin, H, W = x_nchw.shape
    P = H * W
    L = len(params)
    Cout = params[0][0].shape[-1]
    Cout_p = _round_up(Cout, 8)
    c_max = _round_up(max(Cin, Cout), 8)

    padw = _round_up(W + 1, 128)       # zero gap between images (>= W+1, aligned)
    stride = P + padw                  # per-image lane stride inside the buffer

    if batch_tile is None:
        batch_tile = min(N, 8)

    def vmem_estimate(bt):
        total = bt * stride + padw
        span = bt * stride - padw
        scratch = 3 * c_max * total * 4
        io = 2 * (bt * Cin * P + bt * Cout * P) * 4 \
            + 2 * (L * 9 * Cout_p * c_max + L * Cout_p) * 4
        tmp = 6 * max(c_max, Cout_p) * span * 4       # acc / act / mask temps
        return scratch + io + tmp

    while batch_tile > 1 and vmem_estimate(batch_tile) > 40 * 1024 * 1024:
        batch_tile //= 2
    B = batch_tile
    total = B * stride + padw
    vmem_limit = int(min(max(2 * vmem_estimate(B), 16 * 1024 * 1024),
                         64 * 1024 * 1024))

    # --- pack weights: one (Cout_p, c_max) matrix per (layer, tap); padded
    # channels / padded outputs get zero weights so they contribute nothing.
    w_list, b_list = [], []
    for (w, b) in params:
        cin_l = w.shape[2]
        wt = jnp.transpose(w.reshape(9, cin_l, Cout), (0, 2, 1))      # (9, Cout, cin)
        wt = jnp.pad(wt, ((0, 0), (0, Cout_p - Cout), (0, c_max - cin_l)))
        w_list.append(wt)
        b_list.append(jnp.pad(b, (0, Cout_p - Cout)).reshape(Cout_p, 1))
    w_stack = jnp.concatenate(w_list, axis=0).astype(jnp.float32)     # (L*9, Cout_p, c_max)
    b_stack = jnp.stack(b_list).astype(jnp.float32)                   # (L, Cout_p, 1)

    # --- pad batch so the grid tiles evenly (padded images are discarded).
    Np = _round_up(N, B)
    x_flat = x_nchw.reshape(N, Cin, P)                                # free reshape
    if Np != N:
        x_flat = jnp.pad(x_flat, ((0, Np - N), (0, 0), (0, 0)))

    kernel = functools.partial(
        _multiblock_kernel, W=W, P=P, B=B, stride=stride, padw=padw,
        num_layers=L, c_in0=Cin, c_out=Cout)

    out_flat = pl.pallas_call(
        kernel,
        out_shape=jax.ShapeDtypeStruct((Np, Cout, P), x_nchw.dtype),
        grid_spec=pltpu.PrefetchScalarGridSpec(
            num_scalar_prefetch=0,
            grid=(Np // B,),
            in_specs=[
                pl.BlockSpec((B, Cin, P), lambda n: (n, 0, 0)),
                pl.BlockSpec((L * 9, Cout_p, c_max), lambda n: (0, 0, 0)),
                pl.BlockSpec((L, Cout_p, 1), lambda n: (0, 0, 0)),
            ],
            out_specs=pl.BlockSpec((B, Cout, P), lambda n: (n, 0, 0)),
            scratch_shapes=[
                pltpu.VMEM((c_max, total), jnp.float32),   # padded activations
                pltpu.VMEM((c_max, total), jnp.float32),   # left-tap masked copy
                pltpu.VMEM((c_max, total), jnp.float32),   # right-tap masked copy
            ],
        ),
        compiler_params=pltpu.CompilerParams(
            dimension_semantics=("parallel",),
            vmem_limit_bytes=vmem_limit,
        ),
    )(x_flat, w_stack, b_stack)

    out = out_flat.reshape(Np, Cout, H, W)
    return out[:N] if Np != N else out


def _reference_forward(x_nchw, params):
    """Plain-XLA reference: Conv2d(3x3, padding=1) + bias + ReLU, stacked."""
    x = x_nchw
    for (w, b) in params:
        x = jax.lax.conv_general_dilated(
            x, w, window_strides=(1, 1), padding="SAME",
            dimension_numbers=("NCHW", "HWIO", "NCHW"))
        x = jnp.maximum(x + b[None, :, None, None], 0.0)
    return x


if __name__ == "__main__":
    key = jax.random.PRNGKey(0)
    kx, kp = jax.random.split(key)

    # Small shapes consistent with the module: batch=2, in_channels=4,
    # out_channels=8, spatial=16x16, num_layers=2.
    N, Cin, H, W = 2, 4, 16, 16
    Cout, num_layers = 8, 2

    x = jax.random.normal(kx, (N, Cin, H, W), jnp.float32)
    params = init_multiblock_params(kp, num_layers, Cin, Cout)

    out = jax.jit(multiblock_forward)(x, params)
    jax.block_until_ready(out)
    assert out.shape == (N, Cout, H, W), out.shape

    # Numerical sanity check vs. XLA conv.
    ref = _reference_forward(x, params)
    max_err = float(jnp.max(jnp.abs(out - ref)))
    tol = 0.05 * (1.0 + float(jnp.max(jnp.abs(ref))))
    assert max_err <= tol, (max_err, tol)

    print("KERNEL_OK")
</pallas_src>

<mosaic_0001>
module attributes {stable_mosaic.version = 11 : i64} {
  func.func @_multiblock_kernel(%arg0: i32, %arg1: memref<2x4x256xf32, #tpu.memory_space<vmem>>, %arg2: memref<18x8x8xf32, #tpu.memory_space<vmem>>, %arg3: memref<2x8x1xf32, #tpu.memory_space<vmem>>, %arg4: memref<2x8x256xf32, #tpu.memory_space<vmem>>, %arg5: memref<8x896xf32, #tpu.memory_space<vmem>>, %arg6: memref<8x896xf32, #tpu.memory_space<vmem>>, %arg7: memref<8x896xf32, #tpu.memory_space<vmem>>) attributes {dimension_semantics = [#tpu.dimension_semantics<parallel>], iteration_bounds = array<i64: 1>, scalar_prefetch = 0 : i64, scratch_operands = 3 : i64, tpu.core_type = #tpu.core_type<tc>, window_params = [{transform_indices = @transform_0, window_bounds = array<i64: 2, 4, 256>}, {pipeline_mode = #tpu.pipeline_mode<synchronous>, transform_indices = @transform_1, window_bounds = array<i64: 18, 8, 8>}, {pipeline_mode = #tpu.pipeline_mode<synchronous>, transform_indices = @transform_2, window_bounds = array<i64: 2, 8, 1>}, {transform_indices = @transform_3, window_bounds = array<i64: 2, 8, 256>}]} {
    %cst = arith.constant 0.000000e+00 : f32
    %0 = vector.broadcast %cst : f32 to vector<8x128xf32>
    %c0 = arith.constant 0 : index
    %c0_0 = arith.constant 0 : index
    %1 = vector.load %arg5[%c0, %c0_0] : memref<8x896xf32, #tpu.memory_space<vmem>>, vector<8x128xf32>
    tpu.vector_store %arg5[%c0, %c0_0], %0 {strides = array<i32>} : memref<8x896xf32, #tpu.memory_space<vmem>>, vector<8x128xf32>,
    %c0_1 = arith.constant 0 : index
    %c384 = arith.constant 384 : index
    %2 = vector.load %arg5[%c0_1, %c384] : memref<8x896xf32, #tpu.memory_space<vmem>>, vector<8x128xf32>
    tpu.vector_store %arg5[%c0_1, %c384], %0 {strides = array<i32>} : memref<8x896xf32, #tpu.memory_space<vmem>>, vector<8x128xf32>,
    %c0_2 = arith.constant 0 : index
    %c768 = arith.constant 768 : index
    %3 = vector.load %arg5[%c0_2, %c768] : memref<8x896xf32, #tpu.memory_space<vmem>>, vector<8x128xf32>
    tpu.vector_store %arg5[%c0_2, %c768], %0 {strides = array<i32>} : memref<8x896xf32, #tpu.memory_space<vmem>>, vector<8x128xf32>,
    %cst_3 = arith.constant 0.000000e+00 : f32
    %4 = vector.broadcast %cst_3 : f32 to vector<4x256xf32>
    %c4 = arith.constant 4 : index
    %c128 = arith.constant 128 : index
    %5 = vector.load %arg5[%c4, %c128] : memref<8x896xf32, #tpu.memory_space<vmem>>, vector<4x256xf32>
    tpu.vector_store %arg5[%c4, %c128], %4 {strides = array<i32>} : memref<8x896xf32, #tpu.memory_space<vmem>>, vector<4x256xf32>,
    %c4_4 = arith.constant 4 : index
    %c512 = arith.constant 512 : index
    %6 = vector.load %arg5[%c4_4, %c512] : memref<8x896xf32, #tpu.memory_space<vmem>>, vector<4x256xf32>
    tpu.vector_store %arg5[%c4_4, %c512], %4 {strides = array<i32>} : memref<8x896xf32, #tpu.memory_space<vmem>>, vector<4x256xf32>,
    %c0_5 = arith.constant 0 : index
    %c0_6 = arith.constant 0 : index
    %c0_7 = arith.constant 0 : index
    %7 = vector.load %arg1[%c0_5, %c0_6, %c0_7] : memref<2x4x256xf32, #tpu.memory_space<vmem>>, vector<1x4x256xf32>
    %8 = vector.shape_cast %7 : vector<1x4x256xf32> to vector<4x256xf32>
    %c0_8 = arith.constant 0 : index
    %c128_9 = arith.constant 128 : index
    %9 = vector.load %arg5[%c0_8, %c128_9] : memref<8x896xf32, #tpu.memory_space<vmem>>, vector<4x256xf32>
    tpu.vector_store %arg5[%c0_8, %c128_9], %8 {strides = array<i32>} : memref<8x896xf32, #tpu.memory_space<vmem>>, vector<4x256xf32>,
    %c1 = arith.constant 1 : index
    %c0_10 = arith.constant 0 : index
    %c0_11 = arith.constant 0 : index
    %10 = vector.load %arg1[%c1, %c0_10, %c0_11] : memref<2x4x256xf32, #tpu.memory_space<vmem>>, vector<1x4x256xf32>
    %11 = vector.shape_cast %10 : vector<1x4x256xf32> to vector<4x256xf32>
    %c0_12 = arith.constant 0 : index
    %c512_13 = arith.constant 512 : index
    %12 = vector.load %arg5[%c0_12, %c512_13] : memref<8x896xf32, #tpu.memory_space<vmem>>, vector<4x256xf32>
    tpu.vector_store %arg5[%c0_12, %c512_13], %11 {strides = array<i32>} : memref<8x896xf32, #tpu.memory_space<vmem>>, vector<4x256xf32>,
    %13 = tpu.iota {dimensions = array<i32: 1>} : vector<8x896xi32>
    %c256_i32 = arith.constant 256 : i32
    %14 = vector.broadcast %c256_i32 : i32 to vector<8x896xi32>
    %15 = arith.addi %13, %14 : vector<8x896xi32>
    %c384_i32 = arith.constant 384 : i32
    %c0_i32 = arith.constant 0 : i32
    %16 = arith.cmpi eq, %c384_i32, %c0_i32 : i32
    %c1_i32 = arith.constant 1 : i32
    %17 = arith.select %16, %c1_i32, %c384_i32 : i32
    %18 = vector.broadcast %17 : i32 to vector<8x896xi32>
    %19 = arith.remsi %15, %18 : vector<8x896xi32>
    %c0_i32_14 = arith.constant 0 : i32
    %20 = vector.broadcast %c0_i32_14 : i32 to vector<8x896xi32>
    %21 = arith.cmpi ne, %19, %20 : vector<8x896xi32>
    %c0_i32_15 = arith.constant 0 : i32
    %22 = vector.broadcast %c0_i32_15 : i32 to vector<8x896xi32>
    %23 = arith.cmpi slt, %19, %22 : vector<8x896xi32>
    %c0_i32_16 = arith.constant 0 : i32
    %24 = arith.cmpi slt, %17, %c0_i32_16 : i32
    %25 = vector.broadcast %24 : i1 to vector<8x896xi1>
    %26 = vector.broadcast %25 : vector<8x896xi1> to vector<8x896xi1>
    %27 = arith.xori %23, %26 : vector<8x896xi1>
    %28 = arith.andi %27, %21 : vector<8x896xi1>
    %29 = vector.broadcast %17 : i32 to vector<8x896xi32>
    %30 = arith.addi %19, %29 : vector<8x896xi32>
    %31 = arith.select %28, %30, %19 : vector<8x896xi1>, vector<8x896xi32>
    %c16_i32 = arith.constant 16 : i32
    %c0_i32_17 = arith.constant 0 : i32
    %32 = arith.cmpi eq, %c16_i32, %c0_i32_17 : i32
    %c1_i32_18 = arith.constant 1 : i32
    %33 = arith.select %32, %c1_i32_18, %c16_i32 : i32
    %34 = vector.broadcast %33 : i32 to vector<8x896xi32>
    %35 = arith.remsi %31, %34 : vector<8x896xi32>
    %c0_i32_19 = arith.constant 0 : i32
    %36 = vector.broadcast %c0_i32_19 : i32 to vector<8x896xi32>
    %37 = arith.cmpi ne, %35, %36 : vector<8x896xi32>
    %c0_i32_20 = arith.constant 0 : i32
    %38 = vector.broadcast %c0_i32_20 : i32 to vector<8x896xi32>
    %39 = arith.cmpi slt, %35, %38 : vector<8x896xi32>
    %c0_i32_21 = arith.constant 0 : i32
    %40 = arith.cmpi slt, %33, %c0_i32_21 : i32
    %41 = vector.broadcast %40 : i1 to vector<8x896xi1>
    %42 = vector.broadcast %41 : vector<8x896xi1> to vector<8x896xi1>
    %43 = arith.xori %39, %42 : vector<8x896xi1>
    %44 = arith.andi %43, %37 : vector<8x896xi1>
    %45 = vector.broadcast %33 : i32 to vector<8x896xi32>
    %46 = arith.addi %35, %45 : vector<8x896xi32>
    %47 = arith.select %44, %46, %35 : vector<8x896xi1>, vector<8x896xi32>
    %c15_i32 = arith.constant 15 : i32
    %48 = vector.broadcast %c15_i32 : i32 to vector<8x896xi32>
    %49 = arith.cmpi ne, %47, %48 : vector<8x896xi32>
    %c0_i32_22 = arith.constant 0 : i32
    %50 = vector.broadcast %c0_i32_22 : i32 to vector<8x896xi32>
    %51 = arith.cmpi ne, %47, %50 : vector<8x896xi32>
    %52 = tpu.iota {dimensions = array<i32: 1>} : vector<8x640xi32>
    %c384_i32_23 = arith.constant 384 : i32
    %c0_i32_24 = arith.constant 0 : i32
    %53 = arith.cmpi eq, %c384_i32_23, %c0_i32_24 : i32
    %c1_i32_25 = arith.constant 1 : i32
    %54 = arith.select %53, %c1_i32_25, %c384_i32_23 : i32
    %55 = vector.broadcast %54 : i32 to vector<8x640xi32>
    %56 = arith.remsi %52, %55 : vector<8x640xi32>
    %c0_i32_26 = arith.constant 0 : i32
    %57 = vector.broadcast %c0_i32_26 : i32 to vector<8x640xi32>
    %58 = arith.cmpi ne, %56, %57 : vector<8x640xi32>
    %c0_i32_27 = arith.constant 0 : i32
    %59 = vector.broadcast %c0_i32_27 : i32 to vector<8x640xi32>
    %60 = arith.cmpi slt, %56, %59 : vector<8x640xi32>
    %c0_i32_28 = arith.constant 0 : i32
    %61 = arith.cmpi slt, %54, %c0_i32_28 : i32
    %62 = vector.broadcast %61 : i1 to vector<8x640xi1>
    %63 = vector.broadcast %62 : vector<8x640xi1> to vector<8x640xi1>
    %64 = arith.xori %60, %63 : vector<8x640xi1>
    %65 = arith.andi %64, %58 : vector<8x640xi1>
    %66 = vector.broadcast %54 : i32 to vector<8x640xi32>
    %67 = arith.addi %56, %66 : vector<8x640xi32>
    %68 = arith.select %65, %67, %56 : vector<8x640xi1>, vector<8x640xi32>
    %c256_i32_29 = arith.constant 256 : i32
    %69 = vector.broadcast %c256_i32_29 : i32 to vector<8x640xi32>
    %70 = arith.cmpi slt, %68, %69 : vector<8x640xi32>
    %c0_30 = arith.constant 0 : index
    %c0_31 = arith.constant 0 : index
    %71 = vector.load %arg5[%c0_30, %c0_31] : memref<8x896xf32, #tpu.memory_space<vmem>>, vector<8x896xf32>
    %cst_32 = arith.constant 0.000000e+00 : f32
    %72 = vector.broadcast %cst_32 : f32 to vector<8x896xf32>
    %73 = arith.select %49, %71, %72 : vector<8x896xi1>, vector<8x896xf32>
    %c0_33 = arith.constant 0 : index
    %c0_34 = arith.constant 0 : index
    %74 = vector.load %arg6[%c0_33, %c0_34] : memref<8x896xf32, #tpu.memory_space<vmem>>, vector<8x896xf32>
    tpu.vector_store %arg6[%c0_33, %c0_34], %73 {strides = array<i32>} : memref<8x896xf32, #tpu.memory_space<vmem>>, vector<8x896xf32>,
    %cst_35 = arith.constant 0.000000e+00 : f32
    %75 = vector.broadcast %cst_35 : f32 to vector<8x896xf32>
    %76 = arith.select %51, %71, %75 : vector<8x896xi1>, vector<8x896xf32>
    %c0_36 = arith.constant 0 : index
    %c0_37 = arith.constant 0 : index
    %77 = vector.load %arg7[%c0_36, %c0_37] : memref<8x896xf32, #tpu.memory_space<vmem>>, vector<8x896xf32>
    tpu.vector_store %arg7[%c0_36, %c0_37], %76 {strides = array<i32>} : memref<8x896xf32, #tpu.memory_space<vmem>>, vector<8x896xf32>,
    %cst_38 = arith.constant 0.000000e+00 : f32
    %78 = vector.broadcast %cst_38 : f32 to vector<8x640xf32>
    %c0_39 = arith.constant 0 : index
    %c111 = arith.constant 111 : index
    %79 = vector.load %arg6[%c0_39, %c111] : memref<8x896xf32, #tpu.memory_space<vmem>>, vector<8x640xf32>
    %c0_40 = arith.constant 0 : index
    %c0_41 = arith.constant 0 : index
    %c0_42 = arith.constant 0 : index
    %80 = vector.load %arg2[%c0_40, %c0_41, %c0_42] : memref<18x8x8xf32, #tpu.memory_space<vmem>>, vector<1x8x8xf32>
    %81 = vector.shape_cast %80 : vector<1x8x8xf32> to vector<8x8xf32>
    %cst_43 = arith.constant dense<0.000000e+00> : vector<8x640xf32>
    %82 = tpu.matmul %81, %79, %cst_43 {dimension_numbers = #tpu.dot_dimension_numbers<[1], [0], [0], [1], [0, 0, 1, 1], [], []>} : vector<8x8xf32>, vector<8x640xf32>, vector<8x640xf32> -> vector<8x640xf32>
    %83 = arith.addf %78, %82 : vector<8x640xf32>
    %c0_44 = arith.constant 0 : index
    %c112 = arith.constant 112 : index
    %84 = vector.load %arg5[%c0_44, %c112] : memref<8x896xf32, #tpu.memory_space<vmem>>, vector<8x640xf32>
    %c1_45 = arith.constant 1 : index
    %c0_46 = arith.constant 0 : index
    %c0_47 = arith.constant 0 : index
    %85 = vector.load %arg2[%c1_45, %c0_46, %c0_47] : memref<18x8x8xf32, #tpu.memory_space<vmem>>, vector<1x8x8xf32>
    %86 = vector.shape_cast %85 : vector<1x8x8xf32> to vector<8x8xf32>
    %cst_48 = arith.constant dense<0.000000e+00> : vector<8x640xf32>
    %87 = tpu.matmul %86, %84, %cst_48 {dimension_numbers = #tpu.dot_dimension_numbers<[1], [0], [0], [1], [0, 0, 1, 1], [], []>} : vector<8x8xf32>, vector<8x640xf32>, vector<8x640xf32> -> vector<8x640xf32>
    %88 = arith.addf %83, %87 : vector<8x640xf32>
    %c0_49 = arith.constant 0 : index
    %c113 = arith.constant 113 : index
    %89 = vector.load %arg7[%c0_49, %c113] : memref<8x896xf32, #tpu.memory_space<vmem>>, vector<8x640xf32>
    %c2 = arith.constant 2 : index
    %c0_50 = arith.constant 0 : index
    %c0_51 = arith.constant 0 : index
    %90 = vector.load %arg2[%c2, %c0_50, %c0_51] : memref<18x8x8xf32, #tpu.memory_space<vmem>>, vector<1x8x8xf32>
    %91 = vector.shape_cast %90 : vector<1x8x8xf32> to vector<8x8xf32>
    %cst_52 = arith.constant dense<0.000000e+00> : vector<8x640xf32>
    %92 = tpu.matmul %91, %89, %cst_52 {dimension_numbers = #tpu.dot_dimension_numbers<[1], [0], [0], [1], [0, 0, 1, 1], [], []>} : vector<8x8xf32>, vector<8x640xf32>, vector<8x640xf32> -> vector<8x640xf32>
    %93 = arith.addf %88, %92 : vector<8x640xf32>
    %c0_53 = arith.constant 0 : index
    %c127 = arith.constant 127 : index
    %94 = vector.load %arg6[%c0_53, %c127] : memref<8x896xf32, #tpu.memory_space<vmem>>, vector<8x640xf32>
    %c3 = arith.constant 3 : index
    %c0_54 = arith.constant 0 : index
    %c0_55 = arith.constant 0 : index
    %95 = vector.load %arg2[%c3, %c0_54, %c0_55] : memref<18x8x8xf32, #tpu.memory_space<vmem>>, vector<1x8x8xf32>
    %96 = vector.shape_cast %95 : vector<1x8x8xf32> to vector<8x8xf32>
    %cst_56 = arith.constant dense<0.000000e+00> : vector<8x640xf32>
    %97 = tpu.matmul %96, %94, %cst_56 {dimension_numbers = #tpu.dot_dimension_numbers<[1], [0], [0], [1], [0, 0, 1, 1], [], []>} : vector<8x8xf32>, vector<8x640xf32>, vector<8x640xf32> -> vector<8x640xf32>
    %98 = arith.addf %93, %97 : vector<8x640xf32>
    %c0_57 = arith.constant 0 : index
    %c128_58 = arith.constant 128 : index
    %99 = vector.load %arg5[%c0_57, %c128_58] : memref<8x896xf32, #tpu.memory_space<vmem>>, vector<8x640xf32>
    %c4_59 = arith.constant 4 : index
    %c0_60 = arith.constant 0 : index
    %c0_61 = arith.constant 0 : index
    %100 = vector.load %arg2[%c4_59, %c0_60, %c0_61] : memref<18x8x8xf32, #tpu.memory_space<vmem>>, vector<1x8x8xf32>
    %101 = vector.shape_cast %100 : vector<1x8x8xf32> to vector<8x8xf32>
    %cst_62 = arith.constant dense<0.000000e+00> : vector<8x640xf32>
    %102 = tpu.matmul %101, %99, %cst_62 {dimension_numbers = #tpu.dot_dimension_numbers<[1], [0], [0], [1], [0, 0, 1, 1], [], []>} : vector<8x8xf32>, vector<8x640xf32>, vector<8x640xf32> -> vector<8x640xf32>
    %103 = arith.addf %98, %102 : vector<8x640xf32>
    %c0_63 = arith.constant 0 : index
    %c129 = arith.constant 129 : index
    %104 = vector.load %arg7[%c0_63, %c129] : memref<8x896xf32, #tpu.memory_space<vmem>>, vector<8x640xf32>
    %c5 = arith.constant 5 : index
    %c0_64 = arith.constant 0 : index
    %c0_65 = arith.constant 0 : index
    %105 = vector.load %arg2[%c5, %c0_64, %c0_65] : memref<18x8x8xf32, #tpu.memory_space<vmem>>, vector<1x8x8xf32>
    %106 = vector.shape_cast %105 : vector<1x8x8xf32> to vector<8x8xf32>
    %cst_66 = arith.constant dense<0.000000e+00> : vector<8x640xf32>
    %107 = tpu.matmul %106, %104, %cst_66 {dimension_numbers = #tpu.dot_dimension_numbers<[1], [0], [0], [1], [0, 0, 1, 1], [], []>} : vector<8x8xf32>, vector<8x640xf32>, vector<8x640xf32> -> vector<8x640xf32>
    %108 = arith.addf %103, %107 : vector<8x640xf32>
    %c0_67 = arith.constant 0 : index
    %c143 = arith.constant 143 : index
    %109 = vector.load %arg6[%c0_67, %c143] : memref<8x896xf32, #tpu.memory_space<vmem>>, vector<8x640xf32>
    %c6 = arith.constant 6 : index
    %c0_68 = arith.constant 0 : index
    %c0_69 = arith.constant 0 : index
    %110 = vector.load %arg2[%c6, %c0_68, %c0_69] : memref<18x8x8xf32, #tpu.memory_space<vmem>>, vector<1x8x8xf32>
    %111 = vector.shape_cast %110 : vector<1x8x8xf32> to vector<8x8xf32>
    %cst_70 = arith.constant dense<0.000000e+00> : vector<8x640xf32>
    %112 = tpu.matmul %111, %109, %cst_70 {dimension_numbers = #tpu.dot_dimension_numbers<[1], [0], [0], [1], [0, 0, 1, 1], [], []>} : vector<8x8xf32>, vector<8x640xf32>, vector<8x640xf32> -> vector<8x640xf32>
    %113 = arith.addf %108, %112 : vector<8x640xf32>
    %c0_71 = arith.constant 0 : index
    %c144 = arith.constant 144 : index
    %114 = vector.load %arg5[%c0_71, %c144] : memref<8x896xf32, #tpu.memory_space<vmem>>, vector<8x640xf32>
    %c7 = arith.constant 7 : index
    %c0_72 = arith.constant 0 : index
    %c0_73 = arith.constant 0 : index
    %115 = vector.load %arg2[%c7, %c0_72, %c0_73] : memref<18x8x8xf32, #tpu.memory_space<vmem>>, vector<1x8x8xf32>
    %116 = vector.shape_cast %115 : vector<1x8x8xf32> to vector<8x8xf32>
    %cst_74 = arith.constant dense<0.000000e+00> : vector<8x640xf32>
    %117 = tpu.matmul %116, %114, %cst_74 {dimension_numbers = #tpu.dot_dimension_numbers<[1], [0], [0], [1], [0, 0, 1, 1], [], []>} : vector<8x8xf32>, vector<8x640xf32>, vector<8x640xf32> -> vector<8x640xf32>
    %118 = arith.addf %113, %117 : vector<8x640xf32>
    %c0_75 = arith.constant 0 : index
    %c145 = arith.constant 145 : index
    %119 = vector.load %arg7[%c0_75, %c145] : memref<8x896xf32, #tpu.memory_space<vmem>>, vector<8x640xf32>
    %c8 = arith.constant 8 : index
    %c0_76 = arith.constant 0 : index
    %c0_77 = arith.constant 0 : index
    %120 = vector.load %arg2[%c8, %c0_76, %c0_77] : memref<18x8x8xf32, #tpu.memory_space<vmem>>, vector<1x8x8xf32>
    %121 = vector.shape_cast %120 : vector<1x8x8xf32> to vector<8x8xf32>
    %cst_78 = arith.constant dense<0.000000e+00> : vector<8x640xf32>
    %122 = tpu.matmul %121, %119, %cst_78 {dimension_numbers = #tpu.dot_dimension_numbers<[1], [0], [0], [1], [0, 0, 1, 1], [], []>} : vector<8x8xf32>, vector<8x640xf32>, vector<8x640xf32> -> vector<8x640xf32>
    %123 = arith.addf %118, %122 : vector<8x640xf32>
    %c0_79 = arith.constant 0 : index
    %c0_80 = arith.constant 0 : index
    %c0_81 = arith.constant 0 : index
    %124 = vector.load %arg3[%c0_79, %c0_80, %c0_81] : memref<2x8x1xf32, #tpu.memory_space<vmem>>, vector<1x8x1xf32>
    %125 = vector.shape_cast %124 : vector<1x8x1xf32> to vector<8x1xf32>
    %126 = vector.broadcast %125 : vector<8x1xf32> to vector<8x640xf32>
    %127 = arith.addf %123, %126 : vector<8x640xf32>
    %cst_82 = arith.constant 0.000000e+00 : f32
    %128 = vector.broadcast %cst_82 : f32 to vector<8x640xf32>
    %129 = arith.maximumf %127, %128 : vector<8x640xf32>
    %cst_83 = arith.constant 0.000000e+00 : f32
    %130 = vector.broadcast %cst_83 : f32 to vector<8x640xf32>
    %131 = arith.select %70, %129, %130 : vector<8x640xi1>, vector<8x640xf32>
    %c0_84 = arith.constant 0 : index
    %c128_85 = arith.constant 128 : index
    %132 = vector.load %arg5[%c0_84, %c128_85] : memref<8x896xf32, #tpu.memory_space<vmem>>, vector<8x640xf32>
    tpu.vector_store %arg5[%c0_84, %c128_85], %131 {strides = array<i32>} : memref<8x896xf32, #tpu.memory_space<vmem>>, vector<8x640xf32>,
    %c0_86 = arith.constant 0 : index
    %c0_87 = arith.constant 0 : index
    %133 = vector.load %arg5[%c0_86, %c0_87] : memref<8x896xf32, #tpu.memory_space<vmem>>, vector<8x896xf32>
    %cst_88 = arith.constant 0.000000e+00 : f32
    %134 = vector.broadcast %cst_88 : f32 to vector<8x896xf32>
    %135 = arith.select %49, %133, %134 : vector<8x896xi1>, vector<8x896xf32>
    %c0_89 = arith.constant 0 : index
    %c0_90 = arith.constant 0 : index
    %136 = vector.load %arg6[%c0_89, %c0_90] : memref<8x896xf32, #tpu.memory_space<vmem>>, vector<8x896xf32>
    tpu.vector_store %arg6[%c0_89, %c0_90], %135 {strides = array<i32>} : memref<8x896xf32, #tpu.memory_space<vmem>>, vector<8x896xf32>,
    %cst_91 = arith.constant 0.000000e+00 : f32
    %137 = vector.broadcast %cst_91 : f32 to vector<8x896xf32>
    %138 = arith.select %51, %133, %137 : vector<8x896xi1>, vector<8x896xf32>
    %c0_92 = arith.constant 0 : index
    %c0_93 = arith.constant 0 : index
    %139 = vector.load %arg7[%c0_92, %c0_93] : memref<8x896xf32, #tpu.memory_space<vmem>>, vector<8x896xf32>
    tpu.vector_store %arg7[%c0_92, %c0_93], %138 {strides = array<i32>} : memref<8x896xf32, #tpu.memory_space<vmem>>, vector<8x896xf32>,
    %cst_94 = arith.constant 0.000000e+00 : f32
    %140 = vector.broadcast %cst_94 : f32 to vector<8x640xf32>
    %c0_95 = arith.constant 0 : index
    %c111_96 = arith.constant 111 : index
    %141 = vector.load %arg6[%c0_95, %c111_96] : memref<8x896xf32, #tpu.memory_space<vmem>>, vector<8x640xf32>
    %c9 = arith.constant 9 : index
    %c0_97 = arith.constant 0 : index
    %c0_98 = arith.constant 0 : index
    %142 = vector.load %arg2[%c9, %c0_97, %c0_98] : memref<18x8x8xf32, #tpu.memory_space<vmem>>, vector<1x8x8xf32>
    %143 = vector.shape_cast %142 : vector<1x8x8xf32> to vector<8x8xf32>
    %cst_99 = arith.constant dense<0.000000e+00> : vector<8x640xf32>
    %144 = tpu.matmul %143, %141, %cst_99 {dimension_numbers = #tpu.dot_dimension_numbers<[1], [0], [0], [1], [0, 0, 1, 1], [], []>} : vector<8x8xf32>, vector<8x640xf32>, vector<8x640xf32> -> vector<8x640xf32>
    %145 = arith.addf %140, %144 : vector<8x640xf32>
    %c0_100 = arith.constant 0 : index
    %c112_101 = arith.constant 112 : index
    %146 = vector.load %arg5[%c0_100, %c112_101] : memref<8x896xf32, #tpu.memory_space<vmem>>, vector<8x640xf32>
    %c10 = arith.constant 10 : index
    %c0_102 = arith.constant 0 : index
    %c0_103 = arith.constant 0 : index
    %147 = vector.load %arg2[%c10, %c0_102, %c0_103] : memref<18x8x8xf32, #tpu.memory_space<vmem>>, vector<1x8x8xf32>
    %148 = vector.shape_cast %147 : vector<1x8x8xf32> to vector<8x8xf32>
    %cst_104 = arith.constant dense<0.000000e+00> : vector<8x640xf32>
    %149 = tpu.matmul %148, %146, %cst_104 {dimension_numbers = #tpu.dot_dimension_numbers<[1], [0], [0], [1], [0, 0, 1, 1], [], []>} : vector<8x8xf32>, vector<8x640xf32>, vector<8x640xf32> -> vector<8x640xf32>
    %150 = arith.addf %145, %149 : vector<8x640xf32>
    %c0_105 = arith.constant 0 : index
    %c113_106 = arith.constant 113 : index
    %151 = vector.load %arg7[%c0_105, %c113_106] : memref<8x896xf32, #tpu.memory_space<vmem>>, vector<8x640xf32>
    %c11 = arith.constant 11 : index
    %c0_107 = arith.constant 0 : index
    %c0_108 = arith.constant 0 : index
    %152 = vector.load %arg2[%c11, %c0_107, %c0_108] : memref<18x8x8xf32, #tpu.memory_space<vmem>>, vector<1x8x8xf32>
    %153 = vector.shape_cast %152 : vector<1x8x8xf32> to vector<8x8xf32>
    %cst_109 = arith.constant dense<0.000000e+00> : vector<8x640xf32>
    %154 = tpu.matmul %153, %151, %cst_109 {dimension_numbers = #tpu.dot_dimension_numbers<[1], [0], [0], [1], [0, 0, 1, 1], [], []>} : vector<8x8xf32>, vector<8x640xf32>, vector<8x640xf32> -> vector<8x640xf32>
    %155 = arith.addf %150, %154 : vector<8x640xf32>
    %c0_110 = arith.constant 0 : index
    %c127_111 = arith.constant 127 : index
    %156 = vector.load %arg6[%c0_110, %c127_111] : memref<8x896xf32, #tpu.memory_space<vmem>>, vector<8x640xf32>
    %c12 = arith.constant 12 : index
    %c0_112 = arith.constant 0 : index
    %c0_113 = arith.constant 0 : index
    %157 = vector.load %arg2[%c12, %c0_112, %c0_113] : memref<18x8x8xf32, #tpu.memory_space<vmem>>, vector<1x8x8xf32>
    %158 = vector.shape_cast %157 : vector<1x8x8xf32> to vector<8x8xf32>
    %cst_114 = arith.constant dense<0.000000e+00> : vector<8x640xf32>
    %159 = tpu.matmul %158, %156, %cst_114 {dimension_numbers = #tpu.dot_dimension_numbers<[1], [0], [0], [1], [0, 0, 1, 1], [], []>} : vector<8x8xf32>, vector<8x640xf32>, vector<8x640xf32> -> vector<8x640xf32>
    %160 = arith.addf %155, %159 : vector<8x640xf32>
    %c0_115 = arith.constant 0 : index
    %c128_116 = arith.constant 128 : index
    %161 = vector.load %arg5[%c0_115, %c128_116] : memref<8x896xf32, #tpu.memory_space<vmem>>, vector<8x640xf32>
    %c13 = arith.constant 13 : index
    %c0_117 = arith.constant 0 : index
    %c0_118 = arith.constant 0 : index
    %162 = vector.load %arg2[%c13, %c0_117, %c0_118] : memref<18x8x8xf32, #tpu.memory_space<vmem>>, vector<1x8x8xf32>
    %163 = vector.shape_cast %162 : vector<1x8x8xf32> to vector<8x8xf32>
    %cst_119 = arith.constant dense<0.000000e+00> : vector<8x640xf32>
    %164 = tpu.matmul %163, %161, %cst_119 {dimension_numbers = #tpu.dot_dimension_numbers<[1], [0], [0], [1], [0, 0, 1, 1], [], []>} : vector<8x8xf32>, vector<8x640xf32>, vector<8x640xf32> -> vector<8x640xf32>
    %165 = arith.addf %160, %164 : vector<8x640xf32>
    %c0_120 = arith.constant 0 : index
    %c129_121 = arith.constant 129 : index
    %166 = vector.load %arg7[%c0_120, %c129_121] : memref<8x896xf32, #tpu.memory_space<vmem>>, vector<8x640xf32>
    %c14 = arith.constant 14 : index
    %c0_122 = arith.constant 0 : index
    %c0_123 = arith.constant 0 : index
    %167 = vector.load %arg2[%c14, %c0_122, %c0_123] : memref<18x8x8xf32, #tpu.memory_space<vmem>>, vector<1x8x8xf32>
    %168 = vector.shape_cast %167 : vector<1x8x8xf32> to vector<8x8xf32>
    %cst_124 = arith.constant dense<0.000000e+00> : vector<8x640xf32>
    %169 = tpu.matmul %168, %166, %cst_124 {dimension_numbers = #tpu.dot_dimension_numbers<[1], [0], [0], [1], [0, 0, 1, 1], [], []>} : vector<8x8xf32>, vector<8x640xf32>, vector<8x640xf32> -> vector<8x640xf32>
    %170 = arith.addf %165, %169 : vector<8x640xf32>
    %c0_125 = arith.constant 0 : index
    %c143_126 = arith.constant 143 : index
    %171 = vector.load %arg6[%c0_125, %c143_126] : memref<8x896xf32, #tpu.memory_space<vmem>>, vector<8x640xf32>
    %c15 = arith.constant 15 : index
    %c0_127 = arith.constant 0 : index
    %c0_128 = arith.constant 0 : index
    %172 = vector.load %arg2[%c15, %c0_127, %c0_128] : memref<18x8x8xf32, #tpu.memory_space<vmem>>, vector<1x8x8xf32>
    %173 = vector.shape_cast %172 : vector<1x8x8xf32> to vector<8x8xf32>
    %cst_129 = arith.constant dense<0.000000e+00> : vector<8x640xf32>
    %174 = tpu.matmul %173, %171, %cst_129 {dimension_numbers = #tpu.dot_dimension_numbers<[1], [0], [0], [1], [0, 0, 1, 1], [], []>} : vector<8x8xf32>, vector<8x640xf32>, vector<8x640xf32> -> vector<8x640xf32>
    %175 = arith.addf %170, %174 : vector<8x640xf32>
    %c0_130 = arith.constant 0 : index
    %c144_131 = arith.constant 144 : index
    %176 = vector.load %arg5[%c0_130, %c144_131] : memref<8x896xf32, #tpu.memory_space<vmem>>, vector<8x640xf32>
    %c16 = arith.constant 16 : index
    %c0_132 = arith.constant 0 : index
    %c0_133 = arith.constant 0 : index
    %177 = vector.load %arg2[%c16, %c0_132, %c0_133] : memref<18x8x8xf32, #tpu.memory_space<vmem>>, vector<1x8x8xf32>
    %178 = vector.shape_cast %177 : vector<1x8x8xf32> to vector<8x8xf32>
    %cst_134 = arith.constant dense<0.000000e+00> : vector<8x640xf32>
    %179 = tpu.matmul %178, %176, %cst_134 {dimension_numbers = #tpu.dot_dimension_numbers<[1], [0], [0], [1], [0, 0, 1, 1], [], []>} : vector<8x8xf32>, vector<8x640xf32>, vector<8x640xf32> -> vector<8x640xf32>
    %180 = arith.addf %175, %179 : vector<8x640xf32>
    %c0_135 = arith.constant 0 : index
    %c145_136 = arith.constant 145 : index
    %181 = vector.load %arg7[%c0_135, %c145_136] : memref<8x896xf32, #tpu.memory_space<vmem>>, vector<8x640xf32>
    %c17 = arith.constant 17 : index
    %c0_137 = arith.constant 0 : index
    %c0_138 = arith.constant 0 : index
    %182 = vector.load %arg2[%c17, %c0_137, %c0_138] : memref<18x8x8xf32, #tpu.memory_space<vmem>>, vector<1x8x8xf32>
    %183 = vector.shape_cast %182 : vector<1x8x8xf32> to vector<8x8xf32>
    %cst_139 = arith.constant dense<0.000000e+00> : vector<8x640xf32>
    %184 = tpu.matmul %183, %181, %cst_139 {dimension_numbers = #tpu.dot_dimension_numbers<[1], [0], [0], [1], [0, 0, 1, 1], [], []>} : vector<8x8xf32>, vector<8x640xf32>, vector<8x640xf32> -> vector<8x640xf32>
    %185 = arith.addf %180, %184 : vector<8x640xf32>
    %c1_140 = arith.constant 1 : index
    %c0_141 = arith.constant 0 : index
    %c0_142 = arith.constant 0 : index
    %186 = vector.load %arg3[%c1_140, %c0_141, %c0_142] : memref<2x8x1xf32, #tpu.memory_space<vmem>>, vector<1x8x1xf32>
    %187 = vector.shape_cast %186 : vector<1x8x1xf32> to vector<8x1xf32>
    %188 = vector.broadcast %187 : vector<8x1xf32> to vector<8x640xf32>
    %189 = arith.addf %185, %188 : vector<8x640xf32>
    %cst_143 = arith.constant 0.000000e+00 : f32
    %190 = vector.broadcast %cst_143 : f32 to vector<8x640xf32>
    %191 = arith.maximumf %189, %190 : vector<8x640xf32>
    %cst_144 = arith.constant 0.000000e+00 : f32
    %192 = vector.broadcast %cst_144 : f32 to vector<8x640xf32>
    %193 = arith.select %70, %191, %192 : vector<8x640xi1>, vector<8x640xf32>
    %194 = vector.extract_strided_slice %193 {offsets = [0, 0], sizes = [8, 256], strides = [1, 1]} : vector<8x640xf32> to vector<8x256xf32>
    %c0_145 = arith.constant 0 : index
    %c0_146 = arith.constant 0 : index
    %c0_147 = arith.constant 0 : index
    %195 = vector.load %arg4[%c0_145, %c0_146, %c0_147] : memref<2x8x256xf32, #tpu.memory_space<vmem>>, vector<1x8x256xf32>
    %196 = vector.shape_cast %195 : vector<1x8x256xf32> to vector<8x256xf32>
    %197 = vector.shape_cast %194 : vector<8x256xf32> to vector<1x8x256xf32>
    tpu.vector_store %arg4[%c0_145, %c0_146, %c0_147], %197 {strides = array<i32>} : memref<2x8x256xf32, #tpu.memory_space<vmem>>, vector<1x8x256xf32>,
    %198 = vector.extract_strided_slice %193 {offsets = [0, 384], sizes = [8, 256], strides = [1, 1]} : vector<8x640xf32> to vector<8x256xf32>
    %c1_148 = arith.constant 1 : index
    %c0_149 = arith.constant 0 : index
    %c0_150 = arith.constant 0 : index
    %199 = vector.load %arg4[%c1_148, %c0_149, %c0_150] : memref<2x8x256xf32, #tpu.memory_space<vmem>>, vector<1x8x256xf32>
    %200 = vector.shape_cast %199 : vector<1x8x256xf32> to vector<8x256xf32>
    %201 = vector.shape_cast %198 : vector<8x256xf32> to vector<1x8x256xf32>
    tpu.vector_store %arg4[%c1_148, %c0_149, %c0_150], %201 {strides = array<i32>} : memref<2x8x256xf32, #tpu.memory_space<vmem>>, vector<1x8x256xf32>,
    return
  }
  func.func @transform_0(%arg0: i32) -> (i32, i32, i32) {
    %c0_i32 = arith.constant 0 : i32
    %c0_i32_0 = arith.constant 0 : i32
    %c0_i32_1 = arith.constant 0 : i32
    return %arg0, %c0_i32, %c0_i32_0 : i32, i32, i32
  }
  func.func @transform_1(%arg0: i32) -> (i32, i32, i32) {
    %c0_i32 = arith.constant 0 : i32
    %c0_i32_0 = arith.constant 0 : i32
    %c0_i32_1 = arith.constant 0 : i32
    %c0_i32_2 = arith.constant 0 : i32
    return %c0_i32, %c0_i32_0, %c0_i32_1 : i32, i32, i32
  }
  func.func @transform_2(%arg0: i32) -> (i32, i32, i32) {
    %c0_i32 = arith.constant 0 : i32
    %c0_i32_0 = arith.constant 0 : i32
    %c0_i32_1 = arith.constant 0 : i32
    %c0_i32_2 = arith.constant 0 : i32
    return %c0_i32, %c0_i32_0, %c0_i32_1 : i32, i32, i32
  }
  func.func @transform_3(%arg0: i32) -> (i32, i32, i32) {
    %c0_i32 = arith.constant 0 : i32
    %c0_i32_0 = arith.constant 0 : i32
    %c0_i32_1 = arith.constant 0 : i32
    return %arg0, %c0_i32, %c0_i32_0 : i32, i32, i32
  }
}

</mosaic_0001>

<bundles_post_ra>
// kernel: multiblock_forward.1
= control target key start
LH: loop header
LB: loop body
LE: loop exit
PB: predicated region body
PF: predicated region fallthrough
CT: control target
= control target key end

     0   :  { %v34_v0 = vlaneseq  ;;  %v5243_v1 = vmov 0.0   ;;  %s5244_s16 = smov 16   ;;  %s5246_s17 = smov 15   ;;  %s6007_s0 = inlined_call_operand.vmem [shape: f32[2,4,256], index: 0, kind: input, shape index: {}]   ;;  %s6008_s2 = inlined_call_operand.vmem [shape: f32[2,8,1], index: 2, kind: input, shape index: {}]   ;;  %s6009_s1 = inlined_call_operand.vmem [shape: f32[18,8,8], index: 1, kind: input, shape index: {}]   ;;  %s6010_s3 = inlined_call_operand.vmem [shape: f32[2,8,256], index: 3, kind: output, shape index: {}]  }
   0x1   :  { %17 = vst [vmem:[#allocation2 + $0x8] sm:$0xf0] %v5243_v1  ;;  %v21_v2 = vld [vmem:[%s6007_s0] sm:$0xff]  ;;  %14 = vst [vmem:[#allocation2] sm:$0xff] %v5243_v1  ;;  %v4915_v3 = vld [vmem:[%s6007_s0 + $0x8] sm:$0xff]  ;;  %474 = vmatprep.mubr.f32.mxu0 %v5243_v1  ;;  %545 = vmatprep.mubr.f32.mxu1 %v5243_v1  ;;  %s5245_s0 = smov 17  }
   0x2   :  { %18 = vst [vmem:[#allocation2 + $0x10] sm:$0xf0] %v5243_v1  ;;  %19 = vst [vmem:[#allocation2 + $0x20] sm:$0xf0] %v5243_v1  ;;  %v23_v4 = vcombine.high %v21_v2, %v21_v2  ;;  %v30_v5 = vcombine.high %v4915_v3, %v4915_v3  ;;  %v5287_v6 = vand.u32 127, %v34_v0  ;;  %5205 = vrot.lane.b32.xlu1 %v5243_v1, %s5244_s16  ;;  %s5247_s18 = smov 1  }
   0x3   :  { %20 = vst [vmem:[#allocation2 + $0x28] sm:$0xf0] %v5243_v1  ;;  %25 = vst [vmem:[#allocation2 + $0x8] sm:$0xf] %v21_v2  ;;  %s5248_s19 = smov 127   ;;  %s5249_s20 = smov 113  }
   0x4   :  { %32 = vst [vmem:[#allocation2 + $0x20] sm:$0xf] %v4915_v3  ;;  %26 = vst [vmem:[#allocation2 + $0x10] sm:$0xf] %v23_v4  ;;  %v5292_v7 = vadd.s32 128, %v5287_v6  ;;  %v37_v8 = vadd.s32 256, %v5287_v6 }
   0x5   :  { %33 = vst [vmem:[#allocation2 + $0x28] sm:$0xf] %v30_v5  ;;  %v5296_v9 = vadd.s32 384, %v5287_v6  ;;  %v5299_v10 = vadd.s32 512, %v5287_v6  ;;  %v40_v11 = vadd.s32 640, %v5287_v6  ;;  %s5250_s21 = smov 112  }
   0x6   :  { %v42_v12 = vadd.s32 256, %v5292_v7  ;;  %v43_v13 = vadd.s32 256, %v37_v8  ;;  %v5305_v16 = vmul.u32.u64.low 2863311531, %v37_v8  ;;  %v5306_v17 = vmul.u32.u64.high 2863311531, %v37_v8, %v5305_v16  ;;  %s5251_s22 = smov 111  }
   0x7   :  { %v44_v14 = vadd.s32 256, %v5296_v9  ;;  %v45_v15 = vadd.s32 256, %v5299_v10  ;;  %v5308_v18 = vadd.s32 256, %v40_v11 }
   0x8   :  { %v5310_v19 = vmul.u32.u64.low 2863311531, %v42_v12  ;;  %v5311_v20 = vmul.u32.u64.high 2863311531, %v42_v12, %v5310_v19  ;;  %v5313_v21 = vmul.u32.u64.low 2863311531, %v43_v13  ;;  %v5314_v22 = vmul.u32.u64.high 2863311531, %v43_v13, %v5313_v21 }
   0x9   :  { %v5320_v25 = vmul.u32.u64.low 2863311531, %v44_v14  ;;  %v5321_v26 = vmul.u32.u64.high 2863311531, %v44_v14, %v5320_v25  ;;  %v5323_v27 = vmul.u32.u64.low 2863311531, %v45_v15  ;;  %v5324_v28 = vmul.u32.u64.high 2863311531, %v45_v15, %v5323_v27 }
   0xa   :  { %v5316_v23 = vld [vmem:[#allocation2 + $0x8] sm:$0xff]  ;;  %v5331_v29 = vmul.u32.u64.low 2863311531, %v5308_v18  ;;  %v5332_v30 = vmul.u32.u64.high 2863311531, %v5308_v18, %v5331_v29  ;;  %v54_v32 = vshrl.u32 %v5306_v17, 8  ;;  %v65_v33 = vshrl.u32 %v5311_v20, 8 }
   0xb   :  { %v5318_v24 = vld [vmem:[#allocation2 + $0x20] sm:$0xff]  ;;  %385 = vrot.lane.b32.xlu0 %v5316_v23, %s5244_s16  ;;  %v5334_v31 = vld [vmem:[#allocation2 + $0x10] sm:$0xff]  ;;  %v76_v34 = vshrl.u32 %v5314_v22, 8  ;;  %v87_v36 = vshrl.u32 %v5321_v26, 8  ;;  %v98_v37 = vshrl.u32 %v5324_v28, 8 }
   0xc   :  { %391 = vrot.lane.b32.xlu1 %v5318_v24, %s5244_s16  ;;  %v55_v35 = vmul.u32 384, %v54_v32  ;;  %v66_v38 = vmul.u32 384, %v65_v33  ;;  %v5343_v40 = vld [vmem:[#allocation2 + $0x28] sm:$0xff]  ;;  %v109_v43 = vshrl.u32 %v5332_v30, 8 }
   0xd   :  { %v77_v39 = vmul.u32 384, %v76_v34  ;;  %v88_v42 = vmul.u32 384, %v87_v36 }
   0xe   :  { %v5345_v41 = vsub.s32 %v37_v8, %v55_v35  ;;  %v67_v44 = vsub.s32 %v42_v12, %v66_v38  ;;  %v99_v46 = vmul.u32 384, %v98_v37  ;;  %v110_v58 = vmul.u32 384, %v109_v43 }
   0xf   :  { %387 = vrot.lane.b32.xlu0 %v5334_v31, %s5244_s16  ;;  %v78_v45 = vsub.s32 %v43_v13, %v77_v39  ;;  %v89_v47 = vsub.s32 %v44_v14, %v88_v42 }
  0x10   :  { %vm125_vm0 = vcmp.ne.s32.totalorder %v5345_v41, 0  ;;  %vm132_vm1 = vcmp.lt.s32.totalorder %v5345_v41, 0  ;;  %v5351_v48 = vadd.s32 384, %v5345_v41  ;;  %vm126_vm2 = vcmp.ne.s32.totalorder %v67_v44, 0 }
  0x11   :  { %vm133_vm3 = vcmp.lt.s32.totalorder %v67_v44, 0  ;;  %v147_v49 = vadd.s32 384, %v67_v44  ;;  %vm127_vm4 = vcmp.ne.s32.totalorder %v78_v45, 0  ;;  %vm5355_vm5 = vmand %vm132_vm1, %vm125_vm0  ;;  %vm134_vm7 = vcmp.lt.s32.totalorder %v78_v45, 0 }
  0x12   :  { %vm140_vm6 = vmand %vm133_vm3, %vm126_vm2  ;;  %v148_v51 = vadd.s32 384, %v78_v45  ;;  %vm128_vm8 = vcmp.ne.s32.totalorder %v89_v47, 0  ;;  %vm135_vm9 = vcmp.lt.s32.totalorder %v89_v47, 0  ;;  %v149_v53 = vadd.s32 384, %v89_v47 }
  0x13   :  { %393 = vrot.lane.b32.xlu0 %v5343_v40, %s5244_s16  ;;  %v154_v52 = vsel %vm140_vm6, %v147_v49, %v67_v44  ;;  %vm141_vm10 = vmand %vm134_vm7, %vm127_vm4  ;;  %v153_v54 = vsel %vm5355_vm5, %v5351_v48, %v5345_v41  ;;  %v100_v55 = vsub.s32 %v45_v15, %v99_v46  ;;  %v111_v4 = vsub.s32 %v5308_v18, %v110_v58 }
  0x14   :  { %v168_v56 = vsub.s32 0, %v154_v52  ;;  %v155_v57 = vsel %vm141_vm10, %v148_v51, %v78_v45  ;;  %vm142_vm11 = vmand %vm135_vm9, %vm128_vm8  ;;  %vm167_vm14 = vcmp.lt.s32.totalorder %v154_v52, 0 }
  0x15   :  { %v175_v59 = vsub.s32 0, %v155_v57  ;;  %v156_v60 = vsel %vm142_vm11, %v149_v53, %v89_v47  ;;  %vm129_vm12 = vcmp.ne.s32.totalorder %v100_v55, 0  ;;  %vm136_vm13 = vcmp.lt.s32.totalorder %v100_v55, 0 }
  0x16   :  { %v4917_v61 = vmin.u32 %v168_v56, %v154_v52  ;;  %v182_v62 = vsub.s32 0, %v156_v60  ;;  %v150_v0 = vadd.s32 384, %v100_v55  ;;  %vm143_vm15 = vmand %vm136_vm13, %vm129_vm12  ;;  %vm174_vm0 = vcmp.lt.s32.totalorder %v155_v57, 0 }
  0x17   :  { %v4918_v63 = vmin.u32 %v175_v59, %v155_v57  ;;  %vm181_vm1 = vcmp.lt.s32.totalorder %v156_v60, 0  ;;  %vm130_vm2 = vcmp.ne.s32.totalorder %v111_v4, 0  ;;  %vm137_vm3 = vcmp.lt.s32.totalorder %v111_v4, 0  ;;  %v2606_v57 = vld [vmem:[%s6008_s2] sm:$0xff] }
  0x18   :  { %v171_v2 = vand.u32 15, %v4917_v61  ;;  %v4919_v3 = vmin.u32 %v182_v62, %v156_v60  ;;  %v157_v8 = vsel %vm143_vm15, %v150_v0, %v100_v55  ;;  %v151_v30 = vadd.s32 384, %v111_v4 }
  0x19   :  { %v178_v5 = vand.u32 15, %v4918_v63  ;;  %v189_v13 = vsub.s32 0, %v157_v8  ;;  %v5252_v56 = vmov 0  }
  0x1a   :  { %v172_v11 = vsub.s32 0, %v171_v2  ;;  %v185_v12 = vand.u32 15, %v4919_v3  ;;  %5234 = vset.pattern.permute.xlu0 %v5252_v56 }
  0x1b   :  { %v179_v14 = vsub.s32 0, %v178_v5  ;;  %v4920_v17 = vmin.u32 %v189_v13, %v157_v8 }
  0x1c   :  { %v173_v15 = vsel %vm167_vm14, %v172_v11, %v171_v2  ;;  %v186_v16 = vsub.s32 0, %v185_v12 }
  0x1d   :  { %vm210_vm4 = vcmp.ne.s32.totalorder %v173_v15, 0  ;;  %vm217_vm6 = vcmp.lt.s32.totalorder %v173_v15, 0  ;;  %v231_v19 = vadd.s32 16, %v173_v15  ;;  %v180_v20 = vsel %vm174_vm0, %v179_v14, %v178_v5  ;;  %v4923_v5 = vld [vmem:[%s6009_s1 + $0x8] sm:$0xff] }
  0x1e   :  { %vm224_vm7 = vmand %vm217_vm6, %vm210_vm4  ;;  %vm211_vm8 = vcmp.ne.s32.totalorder %v180_v20, 0  ;;  %vm218_vm9 = vcmp.lt.s32.totalorder %v180_v20, 0  ;;  %v232_v18 = vadd.s32 16, %v180_v20  ;;  %v187_v22 = vsel %vm181_vm1, %v186_v16, %v185_v12 }
  0x1f   :  { %v5364_v21 = vsel %vm224_vm7, %v231_v19, %v173_v15  ;;  %vm225_vm10 = vmand %vm218_vm9, %vm211_vm8  ;;  %vm212_vm12 = vcmp.ne.s32.totalorder %v187_v22, 0  ;;  %vm219_vm13 = vcmp.lt.s32.totalorder %v187_v22, 0  ;;  %v233_v27 = vadd.s32 16, %v187_v22  ;;  %v368_v19 = vld [vmem:[%s6009_s1] sm:$0xff] }
  0x20   :  { %vm245_vm11 = vcmp.ne.s32.totalorder %v5364_v21, 15  ;;  %v5368_v25 = vsel %vm225_vm10, %v232_v18, %v180_v20  ;;  %vm226_vm15 = vmand %vm219_vm13, %vm212_vm12  ;;  %v192_v29 = vand.u32 15, %v4920_v17  ;;  %vm188_vm0 = vcmp.lt.s32.totalorder %v157_v8, 0 }
  0x21   :  { %v5373_v26 = vsel %vm245_vm11, %v5316_v23, 0.0  ;;  %vm246_vm14 = vcmp.ne.s32.totalorder %v5368_v25, 15  ;;  %v5382_v32 = vsel %vm226_vm15, %v233_v27, %v187_v22  ;;  %vm144_vm1 = vmand %vm137_vm3, %vm130_vm2  ;;  %vm252_vm6 = vcmp.ne.s32.totalorder %v5364_v21, 0 }
  0x22   :  { %630 = vrot.lane.b32.xlu1 %v5373_v26, %s5245_s0  ;;  %v336_v28 = vsel %vm246_vm14, %v5334_v31, 0.0  ;;  %vm247_vm4 = vcmp.ne.s32.totalorder %v5382_v32, 15  ;;  %v193_v33 = vsub.s32 0, %v192_v29  ;;  %v158_v35 = vsel %vm144_vm1, %v151_v30, %v111_v4 }
  0x23   :  { %632 = vrot.lane.b32.xlu0 %v336_v28, %s5245_s0  ;;  %v349_v37 = vsel %vm252_vm6, %v5316_v23, 0.0  ;;  %v196_v38 = vsub.s32 0, %v158_v35  ;;  %vm253_vm3 = vcmp.ne.s32.totalorder %v5368_v25, 0  ;;  %vm195_vm12 = vcmp.lt.s32.totalorder %v158_v35, 0 }
  0x24   :  { %v194_v34 = vsel %vm188_vm0, %v193_v33, %v192_v29  ;;  %v350_v45 = vsel %vm253_vm3, %v5334_v31, 0.0  ;;  %vm6042_vm5 = vcmp.ne.s32.totalorder %v5382_v32, 0 }
  0x25   :  { %vm213_vm8 = vcmp.ne.s32.totalorder %v194_v34, 0  ;;  %vm220_vm9 = vcmp.lt.s32.totalorder %v194_v34, 0  ;;  %v234_v36 = vadd.s32 16, %v194_v34  ;;  %v4921_v42 = vmin.u32 %v196_v38, %v158_v35 }
  0x26   :  { %5210 = vrot.lane.b32.xlu1 %v5243_v1, %s5245_s0  ;;  %vm227_vm10 = vmand %vm220_vm9, %vm213_vm8 }
  0x27   :  { %v5394_v39 = vsel %vm227_vm10, %v234_v36, %v194_v34  ;;  %v199_v44 = vand.u32 15, %v4921_v42  ;;  %vm6011_vm10 = vcmask 130048   ;;  %v4930_v34 = vld [vmem:[%s6009_s1 + $0x10] sm:$0xff] }
  0x28   :  { %vm248_vm2 = vcmp.ne.s32.totalorder %v5394_v39, 15  ;;  %vm255_vm13 = vcmp.ne.s32.totalorder %v5394_v39, 0  ;;  %v5796_v39 = vld [vmem:[#allocation2] sm:$0xff] }
  0x29   :  { %v338_v43 = vsel %vm248_vm2, %v5318_v24, 0.0  ;;  %v200_v46 = vsub.s32 0, %v199_v44  ;;  %v352_v49 = vsel %vm255_vm13, %v5318_v24, 0.0 }
  0x2a   :  { %636 = vrot.lane.b32.xlu0 %v338_v43, %s5245_s0  ;;  %882 = vrot.lane.b32.xlu1 %v349_v37, %s5246_s17 }
  0x2b   :  { %v201_v47 = vsel %vm195_vm12, %v200_v46, %v199_v44  ;;  %vm6021_vm12 = vcmask 64512  }
  0x2c   :  { %vm214_vm15 = vcmp.ne.s32.totalorder %v201_v47, 0  ;;  %vm221_vm0 = vcmp.lt.s32.totalorder %v201_v47, 0  ;;  %v235_v51 = vadd.s32 16, %v201_v47 }
  0x2d   :  { %vm228_vm1 = vmand %vm221_vm0, %vm214_vm15  ;;  %vm6019_vm15 = vmmov 0   ;;  %vm6014_vm0 = vcmask 138240  }
  0x2e   :  { %884 = vrot.lane.b32.xlu0 %v350_v45, %s5246_s17  ;;  %5215 = vrot.lane.b32.xlu1 %v5243_v1, %s5246_s17  ;;  %v5413_v52 = vsel %vm228_vm1, %v235_v51, %v201_v47  ;;  %vm6013_vm1 = vcmask 121856  }
  0x2f   :  { %vm6022_vm8 = vcmp.ne.s32.totalorder %v5413_v52, 15  ;;  %vm6023_vm9 = vcmp.ne.s32.totalorder %v5413_v52, 0 }
  0x30   :  { %v339_v53 = vsel %vm6022_vm8, %v5343_v40, 0.0  ;;  %v353_v55 = vsel %vm6023_vm9, %v5343_v40, 0.0 }
  0x32   :  { %888 = vrot.lane.b32.xlu1 %v352_v49, %s5246_s17  ;;  %638 = vrot.lane.b32.xlu0 %v339_v53, %s5245_s0 }
  0x36   :  { %1127 = vrot.lane.b32.xlu1 %v5373_v26, %s5247_s18  ;;  %890 = vrot.lane.b32.xlu0 %v353_v55, %s5246_s17 }
  0x3a   :  { %5220 = vrot.lane.b32.xlu1 %v5243_v1, %s5247_s18  ;;  %1129 = vrot.lane.b32.xlu0 %v336_v28, %s5247_s18 }
  0x3e   :  { %1135 = vrot.lane.b32.xlu1 %v339_v53, %s5247_s18  ;;  %1133 = vrot.lane.b32.xlu0 %v338_v43, %s5247_s18 }
  0x42   :  { %5225 = vrot.lane.b32.xlu1 %v5243_v1, %s5248_s19  ;;  %1606 = vrot.lane.b32.xlu0 %v350_v45, %s5248_s19 }
  0x46   :  { %1610 = vrot.lane.b32.xlu1 %v352_v49, %s5248_s19  ;;  %1604 = vrot.lane.b32.xlu0 %v349_v37, %s5248_s19 }
  0x4a   :  { %1863 = vrot.lane.b32.xlu1 %v336_v28, %s5249_s20  ;;  %1612 = vrot.lane.b32.xlu0 %v353_v55, %s5248_s19 }
  0x4e   :  { %1861 = vrot.lane.b32.xlu1 %v5373_v26, %s5249_s20  ;;  %5230 = vrot.lane.b32.xlu0 %v5243_v1, %s5249_s20 }
  0x52   :  { %1869 = vrot.lane.b32.xlu1 %v339_v53, %s5249_s20  ;;  %1867 = vrot.lane.b32.xlu0 %v338_v43, %s5249_s20 }
  0x56   :  { %2122 = vrot.lane.b32.xlu1 %v5243_v1, %s5250_s21  ;;  %2120 = vrot.lane.b32.xlu0 %v5334_v31, %s5250_s21 }
  0x5a   :  { %2124 = vrot.lane.b32.xlu1 %v5318_v24, %s5250_s21  ;;  %2118 = vrot.lane.b32.xlu0 %v5316_v23, %s5250_s21 }
  0x5e   :  { %2365 = vrot.lane.b32.xlu1 %v350_v45, %s5251_s22  ;;  %2126 = vrot.lane.b32.xlu0 %v5343_v40, %s5250_s21 }
  0x62   :  { %2363 = vrot.lane.b32.xlu1 %v349_v37, %s5251_s22  ;;  %2367 = vrot.lane.b32.xlu0 %v5243_v1, %s5251_s22 }
  0x66   :  { %2369 = vrot.lane.b32.xlu1 %v352_v49, %s5251_s22  ;;  %2128 = vrot.lane.b32.xlu0 %v5243_v1, %s5250_s21 }
  0x6a   :  { %2373 = vrot.lane.b32.xlu1 %v5243_v1, %s5251_s22  ;;  %2371 = vrot.lane.b32.xlu0 %v353_v55, %s5251_s22 }
  0x6e   :  { %2931 = vrot.lane.b32.xlu1 %v5243_v1, %s5245_s0  ;;  %2609 = vperm.xlu0 %5234, %v2606_v57  }
  0x72   :  { %2689 = vrot.lane.b32.xlu0 %v5243_v1, %s5244_s16 }
  0x74   :  { %v5206_v58 = vpop.permute.xlu1 %5205 }
  0x75   :  { %v5208_v59 = vunpack.i.h.bf16 %v5206_v58  ;;  %v5207_v61 = vunpack.i.l.bf16 %v5206_v58  ;;  %v4934_v58 = vld [vmem:[%s6009_s1 + $0x18] sm:$0xff] }
  0x76   :  { %3181 = vrot.lane.b32.xlu0 %v5243_v1, %s5246_s17 }
  0x7d   :  { %v386_v60 = vpop.permute.xlu0 %385 }
  0x7e   :  { %v392_v62 = vpop.permute.xlu1 %391  ;;  %v396_v2 = vsel %vm6011_vm10, %v5207_v61, %v386_v60 }
  0x7f   :  { %v399_v63 = vsel %vm6011_vm10, %v5208_v59, %v392_v62 }
  0x80   :  { %481 = vmatprep.subr.mxu1 %v399_v63 }
  0x81   :  { %v388_v0 = vpop.permute.xlu0 %387 }
  0x82   :  { %v397_v3 = vsel %vm6011_vm10, %v386_v60, %v388_v0  ;;  %v398_v4 = vsel %vm6011_vm10, %v388_v0, %v5208_v59 }
  0x83   :  { %410 = vmatprep.subr.mxu0 %v397_v3  ;;  %482 = vmatpush1.msra.mxu1 %v398_v4 }
  0x84   :  { %411 = vmatpush1.msra.mxu0 %v396_v2  ;;  %4925 = vmatmul.mubr.msk.f32.vlgmr.msra.gmra.mrb[0].mxu1 %vm6021_vm12, %v4923_v5 }
  0x85   :  { %v394_v8 = vpop.permute.xlu0 %393  ;;  %5033 = vmatprep.subr.mxu0 %v5243_v1  ;;  %4924 = vmatmul.mubr.msk.f32.vlgmr.msra.gmra.mrb[0].mxu0 %vm6021_vm12, %v4923_v5 }
  0x86   :  { %v400_v11 = vsel %vm6011_vm10, %v392_v62, %v394_v8  ;;  %5035 = vmatprep.mubr.msk.f32.mxu0 %vm6019_vm15, %v5243_v1  ;;  %789 = vmatprep.mubr.f32.mxu1 %v5243_v1  ;;  %vm6012_vm10 = vcmask 7168  }
  0x87   :  { %5034 = vmatpush3.msra.mxu0 %v400_v11 }
  0x89   :  { %5036 = vmatmul.mubr.msk.f32.vlgmr.msra.gmra.mrb[2].mxu0 %vm6021_vm12, %v4923_v5 }
  0x8a   :  { %718 = vmatprep.mubr.f32.mxu0 %v5243_v1 }
  0x94   :  { %v631_v12 = vpop.permute.xlu1 %630 }
  0x95   :  { %v633_v13 = vpop.permute.xlu0 %632 }
  0x96   :  { %v642_v14 = vsel %vm6014_vm0, %v631_v12, %v633_v13 }
  0x97   :  { %654 = vmatprep.subr.mxu0 %v642_v14 }
  0x98   :  { %v5211_v15 = vpop.permute.xlu1 %5210 }
  0x99   :  { %v5213_v16 = vunpack.i.h.bf16 %v5211_v15  ;;  %v5212_v17 = vunpack.i.l.bf16 %v5211_v15 }
  0x9b   :  { %v641_v20 = vsel %vm6014_vm0, %v5212_v17, %v631_v12  ;;  %v643_v26 = vsel %vm6014_vm0, %v633_v13, %v5213_v16 }
  0x9c   :  { %v637_v18 = vpop.permute.xlu0 %636  ;;  %v883_v22 = vpop.permute.xlu1 %882  ;;  %655 = vmatpush1.msra.mxu0 %v641_v20 }
  0x9d   :  { %v644_v27 = vsel %vm6014_vm0, %v5213_v16, %v637_v18  ;;  %4927 = vmatmul.mubr.msk.f32.vlgmr.msra.gmra.mrb[0].mxu0 %vm6021_vm12, %v368_v19 }
  0x9e   :  { %725 = vmatprep.subr.mxu1 %v644_v27  ;;  %970 = vmatprep.mubr.f32.mxu0 %v5243_v1 }
  0x9f   :  { %726 = vmatpush1.msra.mxu1 %v643_v26 }
  0xa0   :  { %v885_v28 = vpop.permute.xlu0 %884  ;;  %4928 = vmatmul.mubr.msk.f32.vlgmr.msra.gmra.mrb[0].mxu1 %vm6021_vm12, %v368_v19  ;;  %v5216_v29 = vpop.permute.xlu1 %5215  ;;  %5038 = vmatprep.subr.mxu1 %v5243_v1 }
  0xa1   :  { %v894_v30 = vsel %vm6013_vm1, %v883_v22, %v885_v28  ;;  %v5217_v33 = vunpack.i.l.bf16 %v5216_v29  ;;  %5040 = vmatprep.mubr.msk.f32.mxu1 %vm6019_vm15, %v5243_v1  ;;  %v5218_v36 = vunpack.i.h.bf16 %v5216_v29 }
  0xa2   :  { %906 = vmatprep.subr.mxu0 %v894_v30 }
  0xa3   :  { %v893_v35 = vsel %vm6013_vm1, %v5217_v33, %v883_v22  ;;  %v895_v45 = vsel %vm6013_vm1, %v885_v28, %v5218_v36  ;;  %v4946_v28 = vld [vmem:[%s6009_s1 + $0x30] sm:$0xff] }
  0xa4   :  { %v889_v37 = vpop.permute.xlu1 %888  ;;  %907 = vmatpush1.msra.mxu0 %v893_v35  ;;  %v639_v38 = vpop.permute.xlu0 %638 }
  0xa5   :  { %4931 = vmatmul.mubr.msk.f32.vlgmr.msra.gmra.mrb[0].mxu0 %vm6021_vm12, %v4930_v34  ;;  %5043 = vmatprep.subr.mxu0 %v5243_v1  ;;  %v896_v42 = vsel %vm6013_vm1, %v5218_v36, %v889_v37  ;;  %v645_v43 = vsel %vm6014_vm0, %v637_v18, %v639_v38  ;;  %vm6017_vm0 = vcmask 916480  }
  0xa6   :  { %5045 = vmatprep.mubr.msk.f32.mxu0 %vm6019_vm15, %v5243_v1  ;;  %5039 = vmatpush3.msra.mxu1 %v645_v43  ;;  %v4950_v43 = vld [vmem:[%s6009_s1 + $0x38] sm:$0xff] }
  0xa7   :  { %5041 = vmatmul.mubr.msk.f32.vlgmr.msra.gmra.mrb[2].mxu1 %vm6021_vm12, %v368_v19  ;;  %977 = vmatprep.subr.mxu1 %v896_v42 }
  0xa8   :  { %v1128_v44 = vpop.permute.xlu1 %1127  ;;  %v891_v46 = vpop.permute.xlu0 %890  ;;  %978 = vmatpush1.msra.mxu1 %v895_v45  ;;  %1041 = vmatprep.mubr.f32.mxu1 %v5243_v1 }
  0xa9   :  { %v897_v47 = vsel %vm6013_vm1, %v889_v37, %v891_v46  ;;  %vm6015_vm1 = vcmask 924672  }
  0xaa   :  { %5044 = vmatpush3.msra.mxu0 %v897_v47 }
  0xab   :  { %5046 = vmatmul.mubr.msk.f32.vlgmr.msra.gmra.mrb[4].mxu0 %vm6021_vm12, %v4930_v34  ;;  %4932 = vmatmul.mubr.msk.f32.vlgmr.msra.gmra.mrb[0].mxu1 %vm6021_vm12, %v4930_v34 }
  0xac   :  { %v5221_v49 = vpop.permute.xlu1 %5220  ;;  %v1130_v53 = vpop.permute.xlu0 %1129  ;;  %1215 = vmatprep.mubr.f32.mxu0 %v5243_v1  ;;  %1286 = vmatprep.mubr.f32.mxu1 %v5243_v1 }
  0xad   :  { %v5222_v51 = vunpack.i.l.bf16 %v5221_v49  ;;  %v5223_v55 = vunpack.i.h.bf16 %v5221_v49  ;;  %v1139_v56 = vsel %vm6012_vm10, %v1128_v44, %v1130_v53 }
  0xae   :  { %1151 = vmatprep.subr.mxu0 %v1139_v56  ;;  %v4954_v56 = vld [vmem:[%s6009_s1 + $0x40] sm:$0xff] }
  0xaf   :  { %v1138_v57 = vsel %vm6012_vm10, %v5222_v51, %v1128_v44  ;;  %v1140_v61 = vsel %vm6012_vm10, %v1130_v53, %v5223_v55 }
  0xb0   :  { %v1136_v59 = vpop.permute.xlu1 %1135  ;;  %1152 = vmatpush1.msra.mxu0 %v1138_v57  ;;  %v1134_v60 = vpop.permute.xlu0 %1133 }
  0xb1   :  { %4935 = vmatmul.mubr.msk.f32.vlgmr.msra.gmra.mrb[0].mxu0 %vm6021_vm12, %v4934_v58  ;;  %1373 = vmatprep.subr.mxu0 %v5334_v31  ;;  %v1141_v62 = vsel %vm6012_vm10, %v5223_v55, %v1134_v60  ;;  %v1142_v63 = vsel %vm6012_vm10, %v1134_v60, %v1136_v59  ;;  %vm6018_vm10 = vcmask 1039360  }
  0xb2   :  { %1374 = vmatpush1.msra.mxu0 %v5316_v23  ;;  %1437 = vmatprep.mubr.f32.mxu0 %v5243_v1  ;;  %v4938_v23 = vld [vmem:[%s6009_s1 + $0x20] sm:$0xff] }
  0xb3   :  { %1222 = vmatprep.subr.mxu1 %v1141_v62  ;;  %5053 = vmatprep.subr.mxu0 %v5243_v1 }
  0xb4   :  { %v5226_v0 = vpop.permute.xlu1 %5225  ;;  %1223 = vmatpush1.msra.mxu1 %v1140_v61  ;;  %v1607_v2 = vpop.permute.xlu0 %1606 }
  0xb5   :  { %4936 = vmatmul.mubr.msk.f32.vlgmr.msra.gmra.mrb[0].mxu1 %vm6021_vm12, %v4934_v58  ;;  %5048 = vmatprep.subr.mxu1 %v5243_v1  ;;  %v5227_v31 = vunpack.i.l.bf16 %v5226_v0  ;;  %v5228_v15 = vunpack.i.h.bf16 %v5226_v0 }
  0xb6   :  { %5049 = vmatpush3.msra.mxu1 %v1142_v63  ;;  %5050 = vmatprep.mubr.msk.f32.mxu1 %vm6019_vm15, %v5243_v1 }
  0xb7   :  { %1444 = vmatprep.subr.mxu1 %v5318_v24  ;;  %v1618_v5 = vsel %vm6018_vm10, %v1607_v2, %v5227_v31 }
  0xb8   :  { %v1611_v3 = vpop.permute.xlu1 %1610  ;;  %v1605_v4 = vpop.permute.xlu0 %1604 }
  0xb9   :  { %5051 = vmatmul.mubr.msk.f32.vlgmr.msra.gmra.mrb[4].mxu1 %vm6021_vm12, %v4934_v58  ;;  %4939 = vmatmul.mubr.msk.f32.vlgmr.msra.gmra.mrb[0].mxu0 %vm6021_vm12, %v4938_v23  ;;  %v1617_v24 = vsel %vm6018_vm10, %v1605_v4, %v1607_v2  ;;  %v1619_v11 = vsel %vm6018_vm10, %v5227_v31, %v1611_v3 }
  0xba   :  { %1445 = vmatpush1.msra.mxu1 %v5243_v1  ;;  %1508 = vmatprep.mubr.f32.mxu1 %v5243_v1 }
  0xbb   :  { %5054 = vmatpush3.msra.mxu0 %v5343_v40  ;;  %5055 = vmatprep.mubr.msk.f32.mxu0 %vm6019_vm15, %v5243_v1  ;;  %v4942_v40 = vld [vmem:[%s6009_s1 + $0x28] sm:$0xff] }
  0xbc   :  { %v1864_v8 = vpop.permute.xlu1 %1863  ;;  %1630 = vmatprep.subr.mxu0 %v1618_v5  ;;  %v1613_v12 = vpop.permute.xlu0 %1612 }
  0xbd   :  { %4940 = vmatmul.mubr.msk.f32.vlgmr.msra.gmra.mrb[0].mxu1 %vm6021_vm12, %v4938_v23  ;;  %5056 = vmatmul.mubr.msk.f32.vlgmr.msra.gmra.mrb[6].mxu0 %vm6021_vm12, %v4938_v23  ;;  %v1620_v13 = vsel %vm6018_vm10, %v1611_v3, %v1613_v12  ;;  %v1621_v22 = vsel %vm6018_vm10, %v1613_v12, %v5228_v15 }
  0xbe   :  { %1631 = vmatpush1.msra.mxu0 %v1617_v24  ;;  %1694 = vmatprep.mubr.f32.mxu0 %v5243_v1 }
  0xbf   :  { %1701 = vmatprep.subr.mxu1 %v1620_v13  ;;  %1765 = vmatprep.mubr.f32.mxu1 %v5243_v1 }
  0xc0   :  { %v1862_v14 = vpop.permute.xlu1 %1861  ;;  %1702 = vmatpush1.msra.mxu1 %v1619_v11  ;;  %v5231_v16 = vpop.permute.xlu0 %5230 }
  0xc1   :  { %4943 = vmatmul.mubr.msk.f32.vlgmr.msra.gmra.mrb[0].mxu0 %vm6021_vm12, %v4942_v40  ;;  %5058 = vmatprep.subr.mxu1 %v5243_v1  ;;  %v5232_v17 = vunpack.i.l.bf16 %v5231_v16  ;;  %v1874_v19 = vsel %vm6015_vm1, %v1862_v14, %v1864_v8  ;;  %v5233_v29 = vunpack.i.h.bf16 %v5231_v16 }
  0xc2   :  { %1951 = vmatprep.mubr.f32.mxu0 %v5243_v1 }
  0xc3   :  { %v1875_v18 = vsel %vm6015_vm1, %v1864_v8, %v5232_v17 }
  0xc4   :  { %v1870_v20 = vpop.permute.xlu1 %1869  ;;  %v1868_v26 = vpop.permute.xlu0 %1867  ;;  %1887 = vmatprep.subr.mxu0 %v1875_v18 }
  0xc5   :  { %4944 = vmatmul.mubr.msk.f32.vlgmr.msra.gmra.mrb[0].mxu1 %vm6021_vm12, %v4942_v40  ;;  %1888 = vmatpush1.msra.mxu0 %v1874_v19  ;;  %v1877_v27 = vsel %vm6015_vm1, %v1868_v26, %v1870_v20  ;;  %v1876_v33 = vsel %vm6015_vm1, %v5232_v17, %v1868_v26  ;;  %v1878_v34 = vsel %vm6015_vm1, %v1870_v20, %v5233_v29  ;;  %vm6016_vm1 = vcmask 908288  }
  0xc6   :  { %5059 = vmatpush3.msra.mxu1 %v1621_v22  ;;  %5060 = vmatprep.mubr.msk.f32.mxu1 %vm6019_vm15, %v5243_v1  ;;  %v5620_v16 = vmul.u32.u64.low 2863311531, %v5287_v6  ;;  %v5621_v17 = vmul.u32.u64.high 2863311531, %v5287_v6, %v5620_v16  ;;  %v5624_v19 = vmul.u32.u64.low 2863311531, %v5292_v7  ;;  %v5625_v20 = vmul.u32.u64.high 2863311531, %v5292_v7, %v5624_v19 }
  0xc7   :  { %1958 = vmatprep.subr.mxu1 %v1877_v27  ;;  %5063 = vmatprep.subr.mxu0 %v5243_v1  ;;  %v5629_v22 = vmul.u32.u64.low 2863311531, %v5296_v9  ;;  %v5630_v26 = vmul.u32.u64.high 2863311531, %v5296_v9, %v5629_v22 }
  0xc8   :  { %v2123_v30 = vpop.permute.xlu1 %2122  ;;  %v2121_v35 = vpop.permute.xlu0 %2120  ;;  %v264_v18 = vshrl.u32 %v5621_v17, 8  ;;  %v275_v27 = vshrl.u32 %v5625_v20, 8 }
  0xc9   :  { %5061 = vmatmul.mubr.msk.f32.vlgmr.msra.gmra.mrb[6].mxu1 %vm6021_vm12, %v4942_v40  ;;  %4947 = vmatmul.mubr.msk.f32.vlgmr.msra.gmra.mrb[0].mxu0 %vm6021_vm12, %v4946_v28  ;;  %v2132_v36 = vsel %vm6017_vm0, %v2121_v35, %v2123_v30 }
  0xca   :  { %1959 = vmatpush1.msra.mxu1 %v1876_v33  ;;  %5064 = vmatpush3.msra.mxu0 %v1878_v34 }
  0xcb   :  { %2022 = vmatprep.mubr.f32.mxu1 %v5243_v1  ;;  %2144 = vmatprep.subr.mxu0 %v2132_v36  ;;  %v276_v36 = vmul.u32 384, %v275_v27 }
  0xcc   :  { %v2125_v37 = vpop.permute.xlu1 %2124  ;;  %5065 = vmatprep.mubr.msk.f32.mxu0 %vm6019_vm15, %v5243_v1  ;;  %v2119_v38 = vpop.permute.xlu0 %2118 }
  0xcd   :  { %4948 = vmatmul.mubr.msk.f32.vlgmr.msra.gmra.mrb[0].mxu1 %vm6021_vm12, %v4946_v28  ;;  %5066 = vmatmul.mubr.msk.f32.vlgmr.msra.gmra.mrb[8].mxu0 %vm6021_vm12, %v4946_v28  ;;  %v2131_v42 = vsel %vm6017_vm0, %v2119_v38, %v2121_v35  ;;  %v2133_v45 = vsel %vm6017_vm0, %v2123_v30, %v2125_v37  ;;  %v5634_v28 = vmul.u32.u64.low 2863311531, %v5299_v10  ;;  %v5635_v29 = vmul.u32.u64.high 2863311531, %v5299_v10, %v5634_v28 }
  0xce   :  { %2208 = vmatprep.mubr.f32.mxu0 %v5243_v1  ;;  %2279 = vmatprep.mubr.f32.mxu1 %v5243_v1  ;;  %v265_v35 = vmul.u32 384, %v264_v18 }
  0xcf   :  { %2145 = vmatpush1.msra.mxu0 %v2131_v42 }
  0xd0   :  { %v2366_v44 = vpop.permute.xlu1 %2365  ;;  %v2127_v46 = vpop.permute.xlu0 %2126 }
  0xd1   :  { %4951 = vmatmul.mubr.msk.f32.vlgmr.msra.gmra.mrb[0].mxu0 %vm6021_vm12, %v4950_v43  ;;  %v2134_v47 = vsel %vm6017_vm0, %v2125_v37, %v2127_v46 }
  0xd2   :  { %2453 = vmatprep.mubr.f32.mxu0 %v5243_v1  ;;  %2215 = vmatprep.subr.mxu1 %v2134_v47 }
  0xd3   :  { %2216 = vmatpush1.msra.mxu1 %v2133_v45  ;;  %v277_v45 = vsub.s32 %v5292_v7, %v276_v36 }
  0xd4   :  { %v2364_v49 = vpop.permute.xlu1 %2363  ;;  %v2368_v51 = vpop.permute.xlu0 %2367  ;;  %5068 = vmatprep.subr.mxu1 %v5243_v1 }
  0xd5   :  { %4952 = vmatmul.mubr.msk.f32.vlgmr.msra.gmra.mrb[0].mxu1 %vm6021_vm12, %v4950_v43  ;;  %v2376_v53 = vsel %vm6016_vm1, %v2364_v49, %v2366_v44  ;;  %v2377_v55 = vsel %vm6016_vm1, %v2366_v44, %v2368_v51  ;;  %v286_v44 = vshrl.u32 %v5630_v26, 8  ;;  %vm303_vm10 = vcmp.ne.s32.totalorder %v277_v45, 0 }
  0xd6   :  { %5070 = vmatprep.mubr.msk.f32.mxu1 %vm6019_vm15, %v5243_v1  ;;  %2389 = vmatprep.subr.mxu0 %v2377_v55 }
  0xd7   :  { %2390 = vmatpush1.msra.mxu0 %v2376_v53  ;;  %v287_v47 = vmul.u32 384, %v286_v44  ;;  %v315_v53 = vadd.s32 384, %v277_v45 }
  0xd8   :  { %v2370_v57 = vpop.permute.xlu1 %2369  ;;  %v2129_v58 = vpop.permute.xlu0 %2128  ;;  %5073 = vmatprep.subr.mxu0 %v5243_v1 }
  0xd9   :  { %4955 = vmatmul.mubr.msk.f32.vlgmr.msra.gmra.mrb[0].mxu0 %vm6021_vm12, %v4954_v56  ;;  %v2135_v59 = vsel %vm6017_vm0, %v2127_v46, %v2129_v58  ;;  %v2378_v61 = vsel %vm6016_vm1, %v2368_v51, %v2370_v57  ;;  %v297_v46 = vshrl.u32 %v5635_v29, 8 }
  0xda   :  { %5075 = vmatprep.mubr.msk.f32.mxu0 %vm6019_vm15, %v5243_v1  ;;  %5069 = vmatpush3.msra.mxu1 %v2135_v59  ;;  %vm307_vm15 = vcmp.lt.s32.totalorder %v277_v45, 0 }
  0xdb   :  { %5071 = vmatmul.mubr.msk.f32.vlgmr.msra.gmra.mrb[8].mxu1 %vm6021_vm12, %v4950_v43  ;;  %v266_v43 = vsub.s32 %v5287_v6, %v265_v35  ;;  %v298_v49 = vmul.u32 384, %v297_v46  ;;  %vm5641_vm8 = vmand %vm307_vm15, %vm303_vm10  ;;  %v288_v6 = vsub.s32 %v5296_v9, %v287_v47 }
  0xdc   :  { %v2374_v60 = vpop.permute.xlu1 %2373  ;;  %v2372_v62 = vpop.permute.xlu0 %2371  ;;  %2524 = vmatprep.mubr.f32.mxu1 %v5243_v1  ;;  %v319_v59 = vsel %vm5641_vm8, %v315_v53, %v277_v45 }
  0xdd   :  { %v2379_v63 = vsel %vm6016_vm1, %v2370_v57, %v2372_v62  ;;  %v2380_v0 = vsel %vm6016_vm1, %v2372_v62, %v2374_v60  ;;  %vm302_vm1 = vcmp.ne.s32.totalorder %v266_v43, 0  ;;  %vm306_vm0 = vcmp.lt.s32.totalorder %v266_v43, 0 }
  0xde   :  { %2460 = vmatprep.subr.mxu1 %v2379_v63  ;;  %5074 = vmatpush3.msra.mxu0 %v2380_v0  ;;  %v314_v51 = vadd.s32 384, %v266_v43  ;;  %v299_v7 = vsub.s32 %v5299_v10, %v298_v49  ;;  %vm304_vm9 = vcmp.ne.s32.totalorder %v288_v6, 0 }
  0xdf   :  { %2461 = vmatpush1.msra.mxu1 %v2378_v61  ;;  %5076 = vmatmul.mubr.msk.f32.vlgmr.msra.gmra.mrb[10].mxu0 %vm6021_vm12, %v4954_v56 }
  0xe0   :  { %4956 = vmatmul.mubr.msk.f32.vlgmr.msra.gmra.mrb[0].mxu1 %vm6021_vm12, %v4954_v56  ;;  %2849 = vmatprep.mubr.f32.mxu0 %v5243_v1  ;;  %vm310_vm12 = vmand %vm306_vm0, %vm302_vm1  ;;  %vm308_vm0 = vcmp.lt.s32.totalorder %v288_v6, 0  ;;  %vm305_vm10 = vcmp.ne.s32.totalorder %v299_v7, 0  ;;  %vm309_vm15 = vcmp.lt.s32.totalorder %v299_v7, 0 }
  0xe1   :  { %2778 = vmatprep.mubr.f32.mxu1 %v5243_v1  ;;  %v318_v57 = vsel %vm310_vm12, %v314_v51, %v266_v43  ;;  %vm5658_vm12 = vcmp.lt.s32.totalorder %v319_v59, 256  ;;  %vm5663_vm8 = vmand %vm308_vm0, %vm304_vm9  ;;  %v2932_v43 = vpop.permute.xlu1 %2931  ;;  %vm6049_vm0 = vmmov 0  }
  0xe2   :  { %vm5651_vm1 = vcmp.lt.s32.totalorder %v318_v57, 256  ;;  %vm5673_vm7 = vmand %vm309_vm15, %vm305_vm10 }
  0xed   :  { %v2610_v56 = vpop.permute.xlu0 %2609 }
 0x15c   :  { %v618_v2 = vpop.f32.mrb[2].mxu0 }
 0x15d   :  { %v5037_v23 = vpop.f32.mrb[3].mxu0 }
 0x17a   :  { %v862_v31 = vpop.f32.mrb[2].mxu1 }
 0x17b   :  { %v863_v3 = vadd.f32 %v862_v31, %v618_v2  ;;  %v5042_v4 = vpop.f32.mrb[3].mxu1 }
 0x17c   :  { %v316_v4 = vadd.s32 384, %v288_v6 }
 0x17e   :  { %v1114_v5 = vpop.f32.mrb[4].mxu0 }
 0x17f   :  { %v1122_v8 = vadd.f32 %v1114_v5, %v863_v3  ;;  %v5047_v24 = vpop.f32.mrb[5].mxu0  ;;  %v317_v5 = vadd.s32 384, %v299_v7 }
 0x18c   :  { %v1359_v11 = vpop.f32.mrb[4].mxu1 }
 0x18d   :  { %v1367_v12 = vadd.f32 %v1359_v11, %v1122_v8  ;;  %v5052_v13 = vpop.f32.mrb[5].mxu1 }
 0x190   :  { %v1581_v40 = vpop.f32.mrb[6].mxu0 }
 0x191   :  { %v1589_v14 = vadd.f32 %v1581_v40, %v1367_v12  ;;  %v5057_v15 = vpop.f32.mrb[7].mxu0 }
 0x192   :  { %v321_v15 = vsel %vm5673_vm7, %v317_v5, %v299_v7 }
 0x193   :  { %vm5715_vm9 = vcmp.lt.s32.totalorder %v321_v15, 256 }
 0x19c   :  { %v1838_v30 = vpop.f32.mrb[6].mxu1 }
 0x19d   :  { %v1846_v33 = vadd.f32 %v1838_v30, %v1589_v14  ;;  %v5062_v34 = vpop.f32.mrb[7].mxu1  ;;  %v320_v14 = vsel %vm5663_vm8, %v316_v4, %v288_v6  ;;  %v4959_v6 = vld [vmem:[%s6009_s1 + $0x50] sm:$0xff] }
 0x19e   :  { %vm5711_vm7 = vcmp.lt.s32.totalorder %v320_v14, 256 }
 0x1a0   :  { %v2095_v37 = vpop.f32.mrb[8].mxu0 }
 0x1a1   :  { %v2103_v38 = vadd.f32 %v2095_v37, %v1846_v33  ;;  %v5067_v42 = vpop.f32.mrb[9].mxu0 }
 0x1a2   :  { %v2690_v42 = vpop.permute.xlu0 %2689 }
 0x1a6   :  { %v3182_v44 = vpop.permute.xlu0 %3181 }
 0x1ac   :  { %v2455_v58 = vpop.f32.mrb[0].mxu0 }
 0x1ad   :  { %v5649_v60 = vadd.f32 %v2610_v56, %v2455_v58  ;;  %v2457_v61 = vpop.f32.mrb[1].mxu0 }
 0x1ae   :  { %v5655_v63 = vadd.f32 %v2610_v56, %v2457_v61  ;;  %v2352_v9 = vpop.f32.mrb[8].mxu1 }
 0x1af   :  { %v2617_v10 = vmax.f32 %v5649_v60, 0.0  ;;  %v2360_v2 = vadd.f32 %v2352_v9, %v2103_v38  ;;  %v5072_v23 = vpop.f32.mrb[9].mxu1 }
 0x1b0   :  { %v2618_v31 = vmax.f32 %v5655_v63, 0.0 }
 0x1b1   :  { %v5671_v8 = vsel %vm5651_vm1, %v2617_v10, 0.0 }
 0x1b2   :  { %2627 = vst [vmem:[#allocation2 + $0x8] sm:$0xff] %v5671_v8  ;;  %v2623_v11 = vsel %vm5658_vm12, %v2618_v31, 0.0  ;;  %2691 = vrot.lane.b32.xlu1 %v5671_v8, %s5244_s16  ;;  %v5687_v12 = vsel %vm252_vm6, %v5671_v8, 0.0  ;;  %v2597_v13 = vpop.f32.mrb[10].mxu0  ;;  %vm5702_vm6 = vcmp.lt.s32.totalorder %v153_v54, 256  ;;  %v2640_v36 = vsel %vm245_vm11, %v5671_v8, 0.0 }
 0x1b3   :  { %2628 = vst [vmem:[#allocation2 + $0x10] sm:$0xff] %v2623_v11  ;;  %3183 = vrot.lane.b32.xlu0 %v5687_v12, %s5246_s17  ;;  %v2526_v40 = vpop.f32.mrb[0].mxu1  ;;  %v2605_v16 = vadd.f32 %v2597_v13, %v2360_v2  ;;  %v5077_v17 = vpop.f32.mrb[11].mxu0  ;;  %v2641_v34 = vsel %vm246_vm14, %v2623_v11, 0.0  ;;  %v2655_v37 = vsel %vm253_vm3, %v2623_v11, 0.0  ;;  %vm6043_vm11 = vcmp.ne.s32.totalorder %v5413_v52, 0 }
 0x1b4   :  { %v5695_v19 = vadd.f32 %v2610_v56, %v2526_v40  ;;  %v2528_v20 = vpop.f32.mrb[1].mxu1  ;;  %vm6044_vm14 = vcmp.ne.s32.totalorder %v5413_v52, 15  ;;  %v4994_v52 = vld [vmem:[%s6008_s2 + $0x8] sm:$0xff]  ;;  %vm6047_vm3 = vcmask 64512  }
 0x1b5   :  { %v5706_v22 = vadd.f32 %v2610_v56, %v2528_v20  ;;  %v5708_v26 = vadd.f32 %v2610_v56, %v2605_v16  ;;  %vm6051_vm15 = vmmov %vm6047_vm3  ;;  %v4966_v16 = vld [vmem:[%s6009_s1 + $0x58] sm:$0xff] }
 0x1b6   :  { %v2619_v27 = vmax.f32 %v5695_v19, 0.0 }
 0x1b7   :  { %v2620_v41 = vmax.f32 %v5706_v22, 0.0  ;;  %v2621_v48 = vmax.f32 %v5708_v26, 0.0 }
 0x1b8   :  { %v2624_v50 = vsel %vm5702_vm6, %v2619_v27, 0.0 }
 0x1b9   :  { %v2625_v54 = vsel %vm5711_vm7, %v2620_v41, 0.0  ;;  %v2626_v30 = vsel %vm5715_vm9, %v2621_v48, 0.0  ;;  %2695 = vrot.lane.b32.xlu1 %v2624_v50, %s5244_s16  ;;  %v2642_v33 = vsel %vm247_vm4, %v2624_v50, 0.0  ;;  %v2656_v21 = vsel %vm6042_vm5, %v2624_v50, 0.0 }
 0x1ba   :  { %2630 = vst [vmem:[#allocation2 + $0x20] sm:$0xff] %v2625_v54  ;;  %2631 = vst [vmem:[#allocation2 + $0x28] sm:$0xff] %v2626_v30  ;;  %2937 = vrot.lane.b32.xlu0 %v2642_v33, %s5245_s0  ;;  %v2657_v35 = vsel %vm255_vm13, %v2625_v54, 0.0  ;;  %v2643_v38 = vsel %vm248_vm2, %v2625_v54, 0.0  ;;  %v2658_v25 = vsel %vm6043_vm11, %v2626_v30, 0.0  ;;  %v2644_v32 = vsel %vm6044_vm14, %v2626_v30, 0.0 }
 0x1bb   :  { %vm6045_vm4 = vcmask 130048   ;;  %vm6053_vm5 = vcmask 138240   ;;  %vm6055_vm14 = vmmov %vm6047_vm3 }
 0x1bc   :  { %vm6046_vm2 = vmmov %vm6045_vm4 }
 0x1bd   :  { %2693 = vrot.lane.b32.xlu1 %v2623_v11, %s5244_s16  ;;  %vm6048_vm13 = vmmov %vm6046_vm2 }
 0x1be   :  { %2935 = vrot.lane.b32.xlu0 %v2641_v34, %s5245_s0  ;;  %vm6050_vm10 = vmmov %vm6046_vm2 }
 0x1bf   :  { %vm6052_vm8 = vmmov %vm6046_vm2 }
 0x1c0   :  { %vm6054_vm11 = vmmov %vm6053_vm5 }
 0x1c1   :  { %2697 = vrot.lane.b32.xlu1 %v2625_v54, %s5244_s16 }
 0x1c2   :  { %3189 = vrot.lane.b32.xlu0 %v2657_v35, %s5246_s17 }
 0x1c5   :  { %2933 = vrot.lane.b32.xlu1 %v2640_v36, %s5245_s0 }
 0x1c6   :  { %2699 = vrot.lane.b32.xlu0 %v2626_v30, %s5244_s16 }
 0x1c9   :  { %3185 = vrot.lane.b32.xlu1 %v2655_v37, %s5246_s17 }
 0x1ca   :  { %3425 = vrot.lane.b32.xlu0 %v2640_v36, %s5247_s18 }
 0x1cd   :  { %2939 = vrot.lane.b32.xlu1 %v2643_v38, %s5245_s0 }
 0x1ce   :  { %3423 = vrot.lane.b32.xlu0 %v5243_v1, %s5247_s18 }
 0x1d1   :  { %3427 = vrot.lane.b32.xlu1 %v2641_v34, %s5247_s18 }
 0x1d2   :  { %3187 = vrot.lane.b32.xlu0 %v2656_v21, %s5246_s17 }
 0x1d5   :  { %3429 = vrot.lane.b32.xlu1 %v2642_v33, %s5247_s18 }
 0x1d6   :  { %3431 = vrot.lane.b32.xlu0 %v2643_v38, %s5247_s18 }
 0x1d9   :  { %3901 = vrot.lane.b32.xlu1 %v2656_v21, %s5248_s19 }
 0x1da   :  { %3899 = vrot.lane.b32.xlu0 %v2655_v37, %s5248_s19 }
 0x1dd   :  { %3903 = vrot.lane.b32.xlu1 %v2657_v35, %s5248_s19 }
 0x1de   :  { %3897 = vrot.lane.b32.xlu0 %v5687_v12, %s5248_s19 }
 0x1e1   :  { %3191 = vrot.lane.b32.xlu1 %v2658_v25, %s5246_s17 }
 0x1e2   :  { %4155 = vrot.lane.b32.xlu0 %v2642_v33, %s5249_s20 }
 0x1e5   :  { %2941 = vrot.lane.b32.xlu1 %v2644_v32, %s5245_s0 }
 0x1e6   :  { %3907 = vrot.lane.b32.xlu0 %v5243_v1, %s5248_s19 }
 0x1e9   :  { %4153 = vrot.lane.b32.xlu1 %v2641_v34, %s5249_s20 }
 0x1ea   :  { %4161 = vrot.lane.b32.xlu0 %v5243_v1, %s5249_s20 }
 0x1ed   :  { %4151 = vrot.lane.b32.xlu1 %v2640_v36, %s5249_s20 }
 0x1ee   :  { %4407 = vrot.lane.b32.xlu0 %v2623_v11, %s5250_s21 }
 0x1f1   :  { %3433 = vrot.lane.b32.xlu1 %v2644_v32, %s5247_s18 }
 0x1f2   :  { %3905 = vrot.lane.b32.xlu0 %v2658_v25, %s5248_s19 }
 0x1f5   :  { %4157 = vrot.lane.b32.xlu1 %v2643_v38, %s5249_s20 }
 0x1f6   :  { %4405 = vrot.lane.b32.xlu0 %v5671_v8, %s5250_s21  ;;  %v4958_v8 = vld [vmem:[%s6009_s1 + $0x48] sm:$0xff] }
 0x1f9   :  { %4409 = vrot.lane.b32.xlu1 %v2624_v50, %s5250_s21 }
 0x1fa   :  { %4413 = vrot.lane.b32.xlu0 %v2626_v30, %s5250_s21 }
 0x1fd   :  { %4411 = vrot.lane.b32.xlu1 %v2625_v54, %s5250_s21 }
 0x1fe   :  { %4649 = vrot.lane.b32.xlu0 %v2655_v37, %s5251_s22 }
 0x201   :  { %4159 = vrot.lane.b32.xlu1 %v2644_v32, %s5249_s20 }
 0x202   :  { %4647 = vrot.lane.b32.xlu0 %v5687_v12, %s5251_s22 }
 0x205   :  { %4415 = vrot.lane.b32.xlu1 %v5796_v39, %s5250_s21 }
 0x206   :  { %4655 = vrot.lane.b32.xlu0 %v2658_v25, %s5251_s22 }
 0x209   :  { %4651 = vrot.lane.b32.xlu1 %v2656_v21, %s5251_s22 }
 0x20a   :  { %4891 = vperm.xlu0 %5234, %v4994_v52   ;;  %v4970_v52 = vld [vmem:[%s6009_s1 + $0x60] sm:$0xff] }
 0x20d   :  { %4653 = vrot.lane.b32.xlu1 %v2657_v35, %s5251_s22 }
 0x211   :  { %4657 = vrot.lane.b32.xlu1 %v5243_v1, %s5251_s22 }
 0x224   :  { %v2692_v45 = vpop.permute.xlu1 %2691 }
 0x225   :  { %v3184_v46 = vpop.permute.xlu0 %3183  ;;  %v2701_v56 = vsel %vm6046_vm2, %v2690_v42, %v2692_v45 }
 0x22b   :  { %v2696_v47 = vpop.permute.xlu1 %2695 }
 0x22c   :  { %v2938_v49 = vpop.permute.xlu0 %2937 }
 0x22f   :  { %v2694_v51 = vpop.permute.xlu1 %2693 }
 0x230   :  { %v2936_v53 = vpop.permute.xlu0 %2935  ;;  %v2702_v55 = vsel %vm6045_vm4, %v2692_v45, %v2694_v51  ;;  %v2703_v58 = vsel %vm6050_vm10, %v2694_v51, %v2696_v47  ;;  %vm6056_vm4 = vcmask 121856   ;;  %vm6059_vm10 = vmmov %vm6053_vm5 }
 0x231   :  { %2714 = vmatprep.subr.mxu1 %v2702_v55  ;;  %vm6057_vm2 = vmmov %vm6056_vm4  ;;  %v2945_v40 = vsel %vm6059_vm10, %v2936_v53, %v2938_v49 }
 0x232   :  { %2715 = vmatpush1.msra.mxu1 %v2701_v56  ;;  %v3193_v24 = vsel %vm6057_vm2, %v3182_v44, %v3184_v46 }
 0x233   :  { %v2698_v1 = vpop.permute.xlu1 %2697  ;;  %4960 = vmatmul.mubr.msk.f32.vlgmr.msra.gmra.mrb[10].mxu1 %vm6047_vm3, %v4959_v6  ;;  %5078 = vmatprep.subr.mxu1 %v5796_v39 }
 0x234   :  { %v5815_v7 = vpop.permute.xlu0 %3189  ;;  %v2704_v57 = vsel %vm6048_vm13, %v2696_v47, %v2698_v1  ;;  %5080 = vmatprep.mubr.msk.f32.mxu1 %vm6049_vm0, %v5796_v39  ;;  %vm6058_vm13 = vmmov %vm6053_vm5 }
 0x235   :  { %2785 = vmatprep.subr.mxu0 %v2704_v57  ;;  %v4982_v57 = vld [vmem:[%s6009_s1 + $0x78] sm:$0xff] }
 0x236   :  { %2786 = vmatpush1.msra.mxu0 %v2703_v58 }
 0x237   :  { %v2934_v59 = vpop.permute.xlu1 %2933  ;;  %4961 = vmatmul.mubr.msk.f32.vlgmr.msra.gmra.mrb[12].mxu0 %vm6051_vm15, %v4959_v6  ;;  %vm6060_vm15 = vmmov %vm6047_vm3 }
 0x238   :  { %v2700_v61 = vpop.permute.xlu0 %2699  ;;  %3091 = vmatprep.mubr.f32.mxu0 %v5796_v39  ;;  %v2944_v2 = vsel %vm6053_vm5, %v2934_v59, %v2936_v53  ;;  %v2943_v23 = vsel %vm6054_vm11, %v2932_v43, %v2934_v59  ;;  %vm6062_vm5 = vmmov %vm6057_vm2  ;;  %vm6063_vm11 = vcmask 7168  }
 0x239   :  { %v2705_v9 = vsel %vm6052_vm8, %v2698_v1, %v2700_v61  ;;  %vm6061_vm8 = vmmov %vm6047_vm3 }
 0x23a   :  { %5079 = vmatpush3.msra.mxu1 %v2705_v9  ;;  %vm6066_vm2 = vmmov %vm6059_vm10 }
 0x23b   :  { %v3186_v3 = vpop.permute.xlu1 %3185  ;;  %5081 = vmatmul.mubr.msk.f32.vlgmr.msra.gmra.mrb[12].mxu1 %vm6055_vm14, %v4959_v6  ;;  %2956 = vmatprep.subr.mxu1 %v2944_v2  ;;  %vm6064_vm14 = vmmov %vm6063_vm11 }
 0x23c   :  { %2957 = vmatpush1.msra.mxu1 %v2943_v23  ;;  %v3426_v4 = vpop.permute.xlu0 %3425  ;;  %v3194_v5 = vsel %vm6056_vm4, %v3184_v46, %v3186_v3  ;;  %3020 = vmatprep.mubr.f32.mxu1 %v5796_v39  ;;  %vm6065_vm4 = vmmov %vm6047_vm3 }
 0x23d   :  { %3206 = vmatprep.subr.mxu1 %v3194_v5  ;;  %vm6069_vm10 = vmmov %vm6065_vm4 }
 0x23f   :  { %v2940_v11 = vpop.permute.xlu1 %2939  ;;  %4963 = vmatmul.mubr.msk.f32.vlgmr.msra.gmra.mrb[10].mxu1 %vm6047_vm3, %v4958_v8  ;;  %vm6067_vm3 = vmmov %vm6062_vm5 }
 0x240   :  { %3207 = vmatpush1.msra.mxu1 %v3193_v24  ;;  %v3424_v12 = vpop.permute.xlu0 %3423  ;;  %v2946_v13 = vsel %vm6058_vm13, %v2938_v49, %v2940_v11  ;;  %3270 = vmatprep.mubr.f32.mxu1 %v5796_v39  ;;  %vm6068_vm13 = vmmov %vm6067_vm3  ;;  %v4986_v24 = vld [vmem:[%s6009_s1 + $0x80] sm:$0xff] }
 0x241   :  { %3027 = vmatprep.subr.mxu0 %v2946_v13  ;;  %5088 = vmatprep.subr.mxu1 %v5796_v39  ;;  %v3435_v38 = vsel %vm6064_vm14, %v3424_v12, %v3426_v4  ;;  %vm6074_vm14 = vmmov %vm6065_vm4 }
 0x242   :  { %3028 = vmatpush1.msra.mxu0 %v2945_v40 }
 0x243   :  { %v3428_v14 = vpop.permute.xlu1 %3427  ;;  %4964 = vmatmul.mubr.msk.f32.vlgmr.msra.gmra.mrb[14].mxu0 %vm6060_vm15, %v4958_v8  ;;  %5083 = vmatprep.subr.mxu0 %v5796_v39  ;;  %vm6070_vm15 = vmmov %vm6065_vm4 }
 0x244   :  { %v3188_v15 = vpop.permute.xlu0 %3187  ;;  %5085 = vmatprep.mubr.msk.f32.mxu0 %vm6049_vm0, %v5796_v39  ;;  %v3436_v37 = vsel %vm6063_vm11, %v3426_v4, %v3428_v14 }
 0x245   :  { %v3196_v42 = vsel %vm6067_vm3, %v3188_v15, %v5815_v7  ;;  %v3195_v43 = vsel %vm6068_vm13, %v3186_v3, %v3188_v15  ;;  %vm6077_vm13 = vmmov %vm6065_vm4 }
 0x247   :  { %v3430_v17 = vpop.permute.xlu1 %3429  ;;  %4967 = vmatmul.mubr.msk.f32.vlgmr.msra.gmra.mrb[10].mxu1 %vm6061_vm8, %v4966_v16  ;;  %vm6071_vm8 = vmmov %vm6063_vm11 }
 0x248   :  { %v3432_v20 = vpop.permute.xlu0 %3431  ;;  %5090 = vmatprep.mubr.msk.f32.mxu1 %vm6049_vm0, %v5796_v39  ;;  %vm6073_vm11 = vmmov %vm6065_vm4 }
 0x249   :  { %v3438_v44 = vsel %vm6071_vm8, %v3430_v17, %v3432_v20 }
 0x24b   :  { %v5848_v50 = vpop.permute.xlu1 %3901 }
 0x24c   :  { %v3900_v54 = vpop.permute.xlu0 %3899 }
 0x24f   :  { %v5850_v30 = vpop.permute.xlu1 %3903 }
 0x250   :  { %v3898_v33 = vpop.permute.xlu0 %3897 }
 0x253   :  { %v3192_v34 = vpop.permute.xlu1 %3191 }
 0x254   :  { %v3197_v35 = vsel %vm6062_vm5, %v5815_v7, %v3192_v34  ;;  %v5854_v36 = vpop.permute.xlu0 %4155  ;;  %vm6072_vm5 = vmmov %vm6071_vm8 }
 0x255   :  { %5089 = vmatpush3.msra.mxu1 %v3197_v35  ;;  %v3437_v45 = vsel %vm6072_vm5, %v3428_v14, %v3430_v17  ;;  %vm6076_vm3 = vmmov %vm6072_vm5  ;;  %vm6081_vm5 = vcmask 924672  }
 0x256   :  { %5091 = vmatmul.mubr.msk.f32.vlgmr.msra.gmra.mrb[14].mxu1 %vm6065_vm4, %v4966_v16  ;;  %3448 = vmatprep.subr.mxu1 %v3436_v37 }
 0x257   :  { %3449 = vmatpush1.msra.mxu1 %v3435_v38  ;;  %v2942_v21 = vpop.permute.xlu1 %2941  ;;  %3512 = vmatprep.mubr.f32.mxu1 %v5796_v39 }
 0x258   :  { %v2947_v25 = vsel %vm6066_vm2, %v2940_v11, %v2942_v21  ;;  %v5861_v32 = vpop.permute.xlu0 %3907  ;;  %5238 = vmatprep.subr.msk.mxu1 %vm5658_vm12, %v2618_v31  ;;  %vm6075_vm2 = vcmask 1039360  }
 0x259   :  { %5084 = vmatpush3.msra.mxu0 %v2947_v25  ;;  %v3910_v49 = vsel %vm6075_vm2, %v3900_v54, %v5848_v50  ;;  %vm6080_vm8 = vmmov %vm6075_vm2 }
 0x25a   :  { %5086 = vmatmul.mubr.msk.f32.vlgmr.msra.gmra.mrb[16].mxu0 %vm6069_vm10, %v4958_v8  ;;  %3277 = vmatprep.subr.mxu0 %v3196_v42  ;;  %vm6078_vm10 = vmmov %vm6075_vm2 }
 0x25b   :  { %4971 = vmatmul.mubr.msk.f32.vlgmr.msra.gmra.mrb[10].mxu1 %vm6070_vm15, %v4970_v52  ;;  %3278 = vmatpush1.msra.mxu0 %v3195_v43  ;;  %v4154_v63 = vpop.permute.xlu1 %4153  ;;  %v3909_v26 = vsel %vm6078_vm10, %v3898_v33, %v3900_v54  ;;  %vm6079_vm15 = vmmov %vm6065_vm4 }
 0x25c   :  { %5239 = vmatpush1.msk.msra.mxu1 %vm5651_vm1, %v2617_v10  ;;  %v5880_v31 = vpop.permute.xlu0 %4161  ;;  %3519 = vmatprep.subr.mxu0 %v3438_v44  ;;  %v4974_v10 = vld [vmem:[%s6009_s1 + $0x68] sm:$0xff]  ;;  %v4164_v22 = vsel %vm6081_vm5, %v4154_v63, %v5854_v36 }
 0x25d   :  { %3341 = vmatprep.mubr.f32.mxu0 %v5796_v39  ;;  %3732 = vmatprep.mubr.f32.mxu1 %v5796_v39 }
 0x25e   :  { %4968 = vmatmul.mubr.msk.f32.vlgmr.msra.gmra.mrb[18].mxu0 %vm6073_vm11, %v4966_v16  ;;  %5098 = vmatprep.subr.mxu1 %v5796_v39  ;;  %vm6083_vm11 = vmmov %vm6065_vm4 }
 0x25f   :  { %3520 = vmatpush1.msra.mxu0 %v3437_v45  ;;  %v4152_v46 = vpop.permute.xlu1 %4151  ;;  %3583 = vmatprep.mubr.f32.mxu0 %v5796_v39 }
 0x260   :  { %v4408_v60 = vpop.permute.xlu0 %4407  ;;  %5093 = vmatprep.subr.mxu0 %v5796_v39 }
 0x262   :  { %4972 = vmatmul.mubr.msk.f32.vlgmr.msra.gmra.mrb[20].mxu0 %vm6074_vm14, %v4970_v52  ;;  %vm6084_vm14 = vmmov %vm6081_vm5 }
 0x263   :  { %4975 = vmatmul.mubr.msk.f32.vlgmr.msra.gmra.mrb[10].mxu1 %vm6065_vm4, %v4974_v10  ;;  %v3434_v47 = vpop.permute.xlu1 %3433  ;;  %5095 = vmatprep.mubr.msk.f32.mxu0 %vm6049_vm0, %v5796_v39  ;;  %v4163_v18 = vsel %vm6084_vm14, %v4152_v46, %v4154_v63 }
 0x264   :  { %5240 = vmatpush3.msk.msra.mxu1 %vm5715_vm9, %v2621_v48  ;;  %v3439_v51 = vsel %vm6076_vm3, %v3432_v20, %v3434_v47  ;;  %v3906_v53 = vpop.permute.xlu0 %3905  ;;  %5100 = vmatprep.mubr.msk.f32.mxu1 %vm6049_vm0, %v5796_v39  ;;  %vm6085_vm3 = vmmov %vm6065_vm4 }
 0x265   :  { %3922 = vmatprep.subr.mxu1 %v3910_v49  ;;  %5094 = vmatpush3.msra.mxu0 %v3439_v51  ;;  %v3912_v55 = vsel %vm6080_vm8, %v5850_v30, %v3906_v53  ;;  %v3913_v1 = vsel %vm6075_vm2, %v3906_v53, %v5861_v32  ;;  %vm6087_vm10 = vmmov %vm6085_vm3 }
 0x266   :  { %5096 = vmatmul.mubr.msk.f32.vlgmr.msra.gmra.mrb[22].mxu0 %vm6077_vm13, %v4970_v52  ;;  %5241 = vmatprep.subr.msk.mxu0 %vm5711_vm7, %v2620_v41  ;;  %v4978_v41 = vld [vmem:[%s6009_s1 + $0x70] sm:$0xff]  ;;  %vm6086_vm13 = vmmov %vm6085_vm3 }
 0x267   :  { %5101 = vmatmul.mubr.msk.f32.vlgmr.msra.gmra.mrb[16].mxu1 %vm6079_vm15, %v4974_v10  ;;  %5242 = vmatpush1.msk.msra.mxu0 %vm5702_vm6, %v2619_v27  ;;  %v4158_v48 = vpop.permute.xlu1 %4157  ;;  %vm6082_vm6 = vmmov %vm6075_vm2 }
 0x268   :  { %3923 = vmatpush1.msra.mxu1 %v3909_v26  ;;  %v4406_v6 = vpop.permute.xlu0 %4405  ;;  %3993 = vmatprep.subr.mxu0 %v3912_v55  ;;  %v3911_v19 = vsel %vm6082_vm6, %v5848_v50, %v5850_v30  ;;  %vm6088_vm15 = vmmov %vm6081_vm5  ;;  %v4165_v2 = vsel %vm6081_vm5, %v5854_v36, %v4158_v48  ;;  %vm6090_vm6 = vcmask 916480   ;;  %v4990_v50 = vld [vmem:[%s6009_s1 + $0x88] sm:$0xff] }
 0x269   :  { %4176 = vmatprep.subr.mxu1 %v4164_v22  ;;  %3803 = vmatprep.mubr.f32.mxu0 %v5796_v39  ;;  %vm6089_vm8 = vmmov %vm6081_vm5 }
 0x26a   :  { %3986 = vmatprep.mubr.f32.mxu1 %v5796_v39  ;;  %4976 = vmatmul.mubr.msk.f32.vlgmr.msra.gmra.mrb[24].mxu0 %vm6083_vm11, %v4974_v10  ;;  %vm6091_vm11 = vmmov %vm6090_vm6 }
 0x26b   :  { %4979 = vmatmul.mubr.msk.f32.vlgmr.msra.gmra.mrb[10].mxu1 %vm6065_vm4, %v4978_v41  ;;  %3994 = vmatpush1.msra.mxu0 %v3911_v19  ;;  %v4410_v27 = vpop.permute.xlu1 %4409  ;;  %v4417_v3 = vsel %vm6091_vm11, %v4406_v6, %v4408_v60  ;;  %vm6092_vm14 = vmmov %vm6085_vm3 }
 0x26c   :  { %4177 = vmatpush1.msra.mxu1 %v4163_v18  ;;  %4057 = vmatprep.mubr.f32.mxu0 %v5796_v39  ;;  %v4414_v56 = vpop.permute.xlu0 %4413  ;;  %v4418_v23 = vsel %vm6090_vm6, %v4408_v60, %v4410_v27  ;;  %vm6093_vm4 = vmmov %vm6085_vm3 }
 0x26d   :  { %5103 = vmatprep.subr.mxu0 %v5796_v39  ;;  %4240 = vmatprep.mubr.f32.mxu1 %v5796_v39  ;;  %vm6094_vm2 = vmmov %vm6090_vm6 }
 0x26e   :  { %4980 = vmatmul.mubr.msk.f32.vlgmr.msra.gmra.mrb[26].mxu0 %vm6085_vm3, %v4978_v41  ;;  %5108 = vmatprep.subr.mxu1 %v5796_v39  ;;  %vm6095_vm3 = vmmov %vm6094_vm2 }
 0x26f   :  { %5104 = vmatpush3.msra.mxu0 %v3913_v1  ;;  %v4412_v7 = vpop.permute.xlu1 %4411  ;;  %5105 = vmatprep.mubr.msk.f32.mxu0 %vm6049_vm0, %v5796_v39  ;;  %vm6101_vm6 = vmmov %vm6093_vm4 }
 0x270   :  { %v4650_v58 = vpop.permute.xlu0 %4649  ;;  %v4420_v4 = vsel %vm6094_vm2, %v4412_v7, %v4414_v56  ;;  %v4419_v8 = vsel %vm6095_vm3, %v4410_v27, %v4412_v7 }
 0x272   :  { %5106 = vmatmul.mubr.msk.f32.vlgmr.msra.gmra.mrb[28].mxu0 %vm6086_vm13, %v4978_v41  ;;  %vm6096_vm13 = vmmov %vm6094_vm2 }
 0x273   :  { %4983 = vmatmul.mubr.msk.f32.vlgmr.msra.gmra.mrb[10].mxu1 %vm6087_vm10, %v4982_v57  ;;  %v4160_v59 = vpop.permute.xlu1 %4159  ;;  %4311 = vmatprep.mubr.f32.mxu0 %v5796_v39  ;;  %vm6097_vm10 = vmmov %vm6093_vm4 }
 0x274   :  { %v4167_v61 = vsel %vm6088_vm15, %v4160_v59, %v5880_v31  ;;  %v4166_v9 = vsel %vm6089_vm8, %v4158_v48, %v4160_v59  ;;  %5110 = vmatprep.mubr.msk.f32.mxu1 %vm6049_vm0, %v5796_v39  ;;  %v4648_v11 = vpop.permute.xlu0 %4647  ;;  %vm6098_vm15 = vmmov %vm6093_vm4  ;;  %vm6099_vm8 = vcmask 908288  }
 0x275   :  { %4247 = vmatprep.subr.mxu0 %v4166_v9  ;;  %5109 = vmatpush3.msra.mxu1 %v4167_v61  ;;  %vm6100_vm5 = vmmov %vm6099_vm8 }
 0x276   :  { %4248 = vmatpush1.msra.mxu0 %v4165_v2  ;;  %4430 = vmatprep.subr.mxu1 %v4418_v23  ;;  %v4659_v14 = vsel %vm6100_vm5, %v4648_v11, %v4650_v58  ;;  %vm6102_vm11 = vmmov %vm6100_vm5 }
 0x277   :  { %5111 = vmatmul.mubr.msk.f32.vlgmr.msra.gmra.mrb[18].mxu1 %vm6092_vm14, %v4982_v57  ;;  %4984 = vmatmul.mubr.msk.f32.vlgmr.msra.gmra.mrb[30].mxu0 %vm6093_vm4, %v4982_v57  ;;  %v4416_v5 = vpop.permute.xlu1 %4415  ;;  %vm6103_vm14 = vmmov %vm6100_vm5 }
 0x278   :  { %4431 = vmatpush1.msra.mxu1 %v4417_v3  ;;  %4501 = vmatprep.subr.mxu0 %v4420_v4  ;;  %v4421_v12 = vsel %vm6096_vm13, %v4414_v56, %v4416_v5  ;;  %v4656_v15 = vpop.permute.xlu0 %4655  ;;  %vm6104_vm2 = vmmov %vm6093_vm4 }
 0x279   :  { %4502 = vmatpush1.msra.mxu0 %v4419_v8  ;;  %4494 = vmatprep.mubr.f32.mxu1 %v5796_v39  ;;  %vm6105_vm3 = vmmov %vm6100_vm5 }
 0x27a   :  { %4565 = vmatprep.mubr.f32.mxu0 %v5796_v39  ;;  %5113 = vmatprep.subr.mxu0 %v5796_v39  ;;  %vm6106_vm13 = vmmov %vm6104_vm2 }
 0x27b   :  { %4987 = vmatmul.mubr.msk.f32.vlgmr.msra.gmra.mrb[10].mxu1 %vm6097_vm10, %v4986_v24  ;;  %4988 = vmatmul.mubr.msk.f32.vlgmr.msra.gmra.mrb[32].mxu0 %vm6098_vm15, %v4986_v24  ;;  %v4652_v13 = vpop.permute.xlu1 %4651 }
 0x27c   :  { %5114 = vmatpush3.msra.mxu0 %v4421_v12  ;;  %v4660_v40 = vsel %vm6099_vm8, %v4650_v58, %v4652_v13  ;;  %5115 = vmatprep.mubr.msk.f32.mxu0 %vm6049_vm0, %v5796_v39 }
 0x27d   :  { %4672 = vmatprep.subr.mxu1 %v4660_v40  ;;  %4736 = vmatprep.mubr.f32.mxu1 %v5796_v39 }
 0x27e   :  { %4673 = vmatpush1.msra.mxu1 %v4659_v14 }
 0x27f   :  { %5116 = vmatmul.mubr.msk.f32.vlgmr.msra.gmra.mrb[34].mxu0 %vm6101_vm6, %v4986_v24  ;;  %v4654_v16 = vpop.permute.xlu1 %4653  ;;  %5118 = vmatprep.subr.mxu1 %v5796_v39 }
 0x280   :  { %v4661_v17 = vsel %vm6102_vm11, %v4652_v13, %v4654_v16  ;;  %v4662_v20 = vsel %vm6103_vm14, %v4654_v16, %v4656_v15  ;;  %4807 = vmatprep.mubr.f32.mxu0 %v5796_v39 }
 0x281   :  { %4743 = vmatprep.subr.mxu0 %v4662_v20 }
 0x282   :  { %4744 = vmatpush1.msra.mxu0 %v4661_v17 }
 0x283   :  { %4991 = vmatmul.mubr.msk.f32.vlgmr.msra.gmra.mrb[10].mxu1 %vm6093_vm4, %v4990_v50  ;;  %4992 = vmatmul.mubr.msk.f32.vlgmr.msra.gmra.mrb[36].mxu0 %vm6104_vm2, %v4990_v50  ;;  %v4658_v54 = vpop.permute.xlu1 %4657 }
 0x284   :  { %v4663_v30 = vsel %vm6105_vm3, %v4656_v15, %v4658_v54  ;;  %5120 = vmatprep.mubr.msk.f32.mxu1 %vm6049_vm0, %v5796_v39 }
 0x285   :  { %5119 = vmatpush3.msra.mxu1 %v4663_v30 }
 0x287   :  { %5121 = vmatmul.mubr.msk.f32.vlgmr.msra.gmra.mrb[20].mxu1 %vm6106_vm13, %v4990_v50 }
 0x289   :  { %v4892_v8 = vpop.permute.xlu0 %4891 }
 0x30a   :  { %v2851_v33 = vpop.f32.mrb[12].mxu0 }
 0x30b   :  { %v2852_v34 = vpop.f32.mrb[13].mxu0 }
 0x30e   :  { %v2921_v35 = vpop.f32.mrb[12].mxu1 }
 0x30f   :  { %v5082_v36 = vpop.f32.mrb[13].mxu1 }
 0x316   :  { %v3093_v37 = vpop.f32.mrb[14].mxu0 }
 0x317   :  { %v3094_v38 = vpop.f32.mrb[15].mxu0 }
 0x318   :  { %v3095_v21 = vadd.f32 %v3094_v38, %v2852_v34 }
 0x329   :  { %v3413_v25 = vpop.f32.mrb[14].mxu1 }
 0x32a   :  { %v5092_v32 = vpop.f32.mrb[15].mxu1 }
 0x32d   :  { %v3163_v52 = vpop.f32.mrb[16].mxu0 }
 0x32e   :  { %v3164_v42 = vadd.f32 %v3163_v52, %v2921_v35  ;;  %v5087_v43 = vpop.f32.mrb[17].mxu0 }
 0x330   :  { %v3420_v63 = vadd.f32 %v3413_v25, %v3164_v42 }
 0x331   :  { %v3343_v44 = vpop.f32.mrb[18].mxu0 }
 0x332   :  { %v3344_v31 = vpop.f32.mrb[19].mxu0 }
 0x333   :  { %v3419_v45 = vadd.f32 %v3344_v31, %v3095_v21 }
 0x335   :  { %v3585_v39 = vpop.f32.mrb[20].mxu0 }
 0x336   :  { %v3586_v46 = vpop.f32.mrb[21].mxu0 }
 0x337   :  { %v3661_v60 = vadd.f32 %v3586_v46, %v3419_v45 }
 0x339   :  { %v3655_v10 = vpop.f32.mrb[22].mxu0 }
 0x33a   :  { %v3662_v47 = vadd.f32 %v3655_v10, %v3420_v63  ;;  %v3875_v49 = vpop.f32.mrb[16].mxu1  ;;  %v5097_v51 = vpop.f32.mrb[23].mxu0 }
 0x33b   :  { %v5102_v53 = vpop.f32.mrb[17].mxu1 }
 0x33c   :  { %v3882_v26 = vadd.f32 %v3875_v49, %v3662_v47 }
 0x33d   :  { %v3805_v48 = vpop.f32.mrb[24].mxu0 }
 0x33e   :  { %v3806_v55 = vpop.f32.mrb[25].mxu0 }
 0x33f   :  { %v3881_v22 = vadd.f32 %v3806_v55, %v3661_v60 }
 0x341   :  { %v4059_v6 = vpop.f32.mrb[26].mxu0 }
 0x342   :  { %v4060_v41 = vpop.f32.mrb[27].mxu0 }
 0x343   :  { %v4135_v19 = vadd.f32 %v4060_v41, %v3881_v22 }
 0x345   :  { %v4129_v18 = vpop.f32.mrb[28].mxu0 }
 0x346   :  { %v4136_v27 = vadd.f32 %v4129_v18, %v3882_v26  ;;  %v5107_v56 = vpop.f32.mrb[29].mxu0 }
 0x34a   :  { %v4383_v1 = vpop.f32.mrb[18].mxu1  ;;  %v4313_v7 = vpop.f32.mrb[30].mxu0 }
 0x34b   :  { %v4390_v57 = vadd.f32 %v4383_v1, %v4136_v27  ;;  %v4314_v58 = vpop.f32.mrb[31].mxu0  ;;  %v5112_v59 = vpop.f32.mrb[19].mxu1 }
 0x34c   :  { %v4389_v61 = vadd.f32 %v4314_v58, %v4135_v19 }
 0x34e   :  { %v4567_v9 = vpop.f32.mrb[32].mxu0 }
 0x34f   :  { %v4568_v2 = vpop.f32.mrb[33].mxu0 }
 0x350   :  { %v4643_v23 = vadd.f32 %v4568_v2, %v4389_v61 }
 0x352   :  { %v4637_v3 = vpop.f32.mrb[34].mxu0 }
 0x353   :  { %v4644_v4 = vadd.f32 %v4637_v3, %v4390_v57  ;;  %v5117_v5 = vpop.f32.mrb[35].mxu0 }
 0x356   :  { %v4738_v24 = vpop.f32.mrb[10].mxu1  ;;  %v4809_v11 = vpop.f32.mrb[36].mxu0 }
 0x357   :  { %v4894_v12 = vadd.f32 %v4892_v8, %v4738_v24  ;;  %v4740_v13 = vpop.f32.mrb[11].mxu1  ;;  %v4810_v40 = vpop.f32.mrb[37].mxu0 }
 0x358   :  { %v4895_v14 = vadd.f32 %v4892_v8, %v4740_v13  ;;  %v4885_v15 = vadd.f32 %v4810_v40, %v4643_v23 }
 0x359   :  { %v4898_v16 = vmax.f32 %v4894_v12, 0.0 }
 0x35a   :  { %v4899_v17 = vmax.f32 %v4895_v14, 0.0  ;;  %v4896_v20 = vadd.f32 %v4892_v8, %v4885_v15  ;;  %v4879_v50 = vpop.f32.mrb[20].mxu1 }
 0x35b   :  { %v4902_v54 = vsel %vm5651_vm1, %v4898_v16, 0.0  ;;  %v4886_v30 = vadd.f32 %v4879_v50, %v4644_v4  ;;  %v5122_v33 = vpop.f32.mrb[21].mxu1 }
 0x35c   :  { %4906 = vst [vmem:[%s6010_s3] sm:$0xff] %v4902_v54  ;;  %v4903_v34 = vsel %vm5658_vm12, %v4899_v17, 0.0  ;;  %v4900_v35 = vmax.f32 %v4896_v20, 0.0 }
 0x35d   :  { %4907 = vst [vmem:[%s6010_s3 + $0x8] sm:$0xff] %v4903_v34  ;;  %v4897_v36 = vadd.f32 %v4892_v8, %v4886_v30 }
 0x35e   :  { %v4904_v37 = vsel %vm5711_vm7, %v4900_v35, 0.0 }
 0x35f   :  { %4995 = vst [vmem:[%s6010_s3 + $0x10] sm:$0xff] %v4904_v37  ;;  %v4901_v62 = vmax.f32 %v4897_v36, 0.0 }
 0x361   :  { %v4905_v38 = vsel %vm5715_vm9, %v4901_v62, 0.0 }
 0x362   :  { %4996 = vst [vmem:[%s6010_s3 + $0x18] sm:$0xff] %v4905_v38 }

</bundles_post_ra>
